<compile_context>
chip_gen: v5e
topology: v5e:2x2
jax: 0.10.0
libtpu: 0.0.40
codegen_flags: <defaults>
</compile_context>

<pallas_src>
import jax
import jax.numpy as jnp
import numpy as np
from jax.experimental import pallas as pl
from jax.experimental.pallas import tpu as pltpu


# ---------------------------------------------------------------------------
# fused kernel: BN(eval, folded) + ReLU + conv (stride 1) via one MXU matmul
# ---------------------------------------------------------------------------
def _make_kernel(KH, KW, P, nb, H, W, Cin, Cout, use_pad_scratch):
    Hp, Wp = H + 2 * P, W + 2 * P
    Ho, Wo = Hp - KH + 1, Wp - KW + 1
    K = KH * KW * Cin

    def body(x_ref, w_ref, scale_ref, shift_ref, o_ref, a_pad_ref):
        # ---- BatchNorm (eval, folded to scale/shift) + ReLU on INPUT channels
        x = x_ref[...]                                        # (nb, H, W, Cin)
        scale = scale_ref[...].reshape(1, 1, 1, Cin)          # lane-preserving
        shift = shift_ref[...].reshape(1, 1, 1, Cin)
        a = jnp.maximum(x * scale + shift, 0.0)

        if use_pad_scratch:
            # ---- zero-padded activation in VMEM scratch (no concat padding)
            a_pad_ref[...] = jnp.zeros_like(a_pad_ref)        # zero the halo
            a_pad_ref[:, P:P + H, P:P + W, :] = a             # one interior store
            cols = [a_pad_ref[:, kh:kh + Ho, kw:kw + Wo, :]
                    for kh in range(KH) for kw in range(KW)]
        else:
            # ---- P == 0 fast path: slice the live value, no VMEM round trip
            cols = [a[:, kh:kh + Ho, kw:kw + Wo, :]
                    for kh in range(KH) for kw in range(KW)]

        # ---- im2col: one (nb*Ho*Wo, KH*KW*Cin) x (KH*KW*Cin, Cout) matmul
        patches = cols[0] if len(cols) == 1 else jnp.concatenate(cols, axis=-1)
        patches = patches.reshape(nb * Ho * Wo, K)            # lane dim unchanged
        y = jnp.dot(patches, w_ref[...], preferred_element_type=jnp.float32)

        # ---- single slab store of the whole output block
        o_ref[...] = y.reshape(nb, Ho, Wo, Cout).astype(o_ref.dtype)

    if use_pad_scratch:
        def kernel(x_ref, w_ref, scale_ref, shift_ref, o_ref, a_pad_ref):
            body(x_ref, w_ref, scale_ref, shift_ref, o_ref, a_pad_ref)
    else:
        def kernel(x_ref, w_ref, scale_ref, shift_ref, o_ref):
            body(x_ref, w_ref, scale_ref, shift_ref, o_ref, None)

    return kernel, Ho, Wo


def _pick_images_per_step(N, H, W, Cin, Cout, KH, KW, P,
                          vmem_budget_bytes=8 << 20):
    """Images per grid step: amortise per-step overhead, stay under a VMEM
    budget, and keep >= 2 grid steps when N >= 2 (both v7x TensorCores)."""
    Hp, Wp = H + 2 * P, W + 2 * P
    Ho, Wo = Hp - KH + 1, Wp - KW + 1
    per_img_bytes = 4 * (2 * H * W * Cin            # double-buffered input block
                         + Hp * Wp * Cin            # pad scratch
                         + Ho * Wo * KH * KW * Cin  # live im2col value
                         + 2 * Ho * Wo * Cout)      # double-buffered output block
    cap = max(1, int(vmem_budget_bytes // per_img_bytes))
    if N >= 2:
        cap = min(cap, N // 2)
    nb = 1
    for d in range(1, cap + 1):                      # largest divisor of N <= cap
        if N % d == 0:
            nb = d
    return nb


def basic_conv2d(x_nchw, w_mat, scale, shift, *, KH, KW, padding,
                 images_per_step=None):
    """BasicConv2d forward: conv(relu(bn(x))), stride 1, conv bias=False.

    x_nchw : (N, Cin, H, W) float32
    w_mat  : (KH*KW*Cin, Cout)  -- PyTorch (Cout,Cin,KH,KW) weight transposed to
                                   (KH,KW,Cin,Cout) and flattened
    scale, shift : (1, Cin)     -- folded eval-mode BatchNorm on the input
    """
    # TODO(synk): stride>1 / dilation (reachable via the module's **kwargs) are
    # not implemented; only the stride-1 convs used in this network are covered.
    N, Cin, H, W = x_nchw.shape
    Cout = w_mat.shape[-1]
    P = padding
    use_pad_scratch = P > 0

    nb = (images_per_step if images_per_step is not None
          else _pick_images_per_step(N, H, W, Cin, Cout, KH, KW, P))
    assert N % nb == 0, (N, nb)

    kernel, Ho, Wo = _make_kernel(KH, KW, P, nb, H, W, Cin, Cout, use_pad_scratch)
    x = jnp.transpose(x_nchw, (0, 2, 3, 1))                   # NCHW -> NHWC

    K = KH * KW * Cin
    flops = 2 * N * Ho * Wo * K * Cout + 3 * N * H * W * Cin  # matmul + BN/ReLU
    bytes_accessed = 4 * (x.size + w_mat.size + scale.size + shift.size
                          + N * Ho * Wo * Cout)

    scratch_shapes = ([pltpu.VMEM((nb, H + 2 * P, W + 2 * P, Cin), jnp.float32)]
                      if use_pad_scratch else [])

    out = pl.pallas_call(
        kernel,
        out_shape=jax.ShapeDtypeStruct((N, Ho, Wo, Cout), jnp.float32),
        grid=(N // nb,),
        in_specs=[
            pl.BlockSpec((nb, H, W, Cin), lambda n: (n, 0, 0, 0)),
            pl.BlockSpec((K, Cout), lambda n: (0, 0)),         # resident weight
            pl.BlockSpec((1, Cin), lambda n: (0, 0)),
            pl.BlockSpec((1, Cin), lambda n: (0, 0)),
        ],
        out_specs=pl.BlockSpec((nb, Ho, Wo, Cout), lambda n: (n, 0, 0, 0)),
        scratch_shapes=scratch_shapes,
        compiler_params=pltpu.CompilerParams(
            dimension_semantics=("parallel",)),
        cost_estimate=pl.CostEstimate(flops=flops, transcendentals=0,
                                      bytes_accessed=bytes_accessed),
    )(x, w_mat, scale, shift)
    return jnp.transpose(out, (0, 3, 1, 2))                    # NHWC -> NCHW


# ---------------------------------------------------------------------------
# deterministic parameter init (conv weight in PyTorch layout + eval-mode BN)
# ---------------------------------------------------------------------------
def init_basic_conv2d(key, cin, cout, k):
    ks = jax.random.split(key, 5)
    w_oihw = jax.random.normal(ks[0], (cout, cin, k, k), jnp.float32) * 0.1
    gamma = jax.random.uniform(ks[1], (cin,), jnp.float32, minval=0.5, maxval=1.5)
    beta = jax.random.normal(ks[2], (cin,), jnp.float32) * 0.1
    rmean = jax.random.normal(ks[3], (cin,), jnp.float32) * 0.1
    rvar = jax.random.uniform(ks[4], (cin,), jnp.float32, minval=0.5, maxval=1.5)
    scale = gamma / jnp.sqrt(rvar + 1e-5)          # BN(eval): y = x*scale + shift
    shift = beta - rmean * scale
    w_hwio = jnp.transpose(w_oihw, (2, 3, 1, 0))   # (KH, KW, Cin, Cout)
    return {
        "w_hwio": w_hwio,
        "w_mat": w_hwio.reshape(k * k * cin, cout),
        "scale": scale.reshape(1, cin),
        "shift": shift.reshape(1, cin),
    }


# ---------------------------------------------------------------------------
# pure-JAX reference for verification
# ---------------------------------------------------------------------------
def ref_basic_conv2d(x_nchw, p, padding):
    x = jnp.transpose(x_nchw, (0, 2, 3, 1))
    a = jnp.maximum(x * p["scale"].reshape(1, 1, 1, -1)
                    + p["shift"].reshape(1, 1, 1, -1), 0.0)
    y = jax.lax.conv_general_dilated(
        a, p["w_hwio"], window_strides=(1, 1),
        padding=[(padding, padding), (padding, padding)],
        dimension_numbers=("NHWC", "HWIO", "NHWC"))
    return jnp.transpose(y, (0, 3, 1, 2))


# ---------------------------------------------------------------------------
if __name__ == "__main__":
    key = jax.random.PRNGKey(0)
    kx, k3, k1 = jax.random.split(key, 3)

    N, Cin, H, W, Cout = 2, 4, 16, 16, 32
    x = jax.random.normal(kx, (N, Cin, H, W), jnp.float32)

    # BasicConv2d(4, 32, kernel_size=3, padding=1)  -- padded / scratch path
    p3 = init_basic_conv2d(k3, Cin, Cout, 3)
    f3 = jax.jit(lambda xx: basic_conv2d(xx, p3["w_mat"], p3["scale"],
                                         p3["shift"], KH=3, KW=3, padding=1))
    out3 = jax.block_until_ready(f3(x))
    ref3 = ref_basic_conv2d(x, p3, 1)
    assert out3.shape == (N, Cout, H, W), out3.shape
    np.testing.assert_allclose(np.asarray(out3), np.asarray(ref3),
                               rtol=1e-4, atol=1e-4)

    # BasicConv2d(4, 32, kernel_size=1)  -- scratch-free fast path
    p1 = init_basic_conv2d(k1, Cin, Cout, 1)
    f1 = jax.jit(lambda xx: basic_conv2d(xx, p1["w_mat"], p1["scale"],
                                         p1["shift"], KH=1, KW=1, padding=0))
    out1 = jax.block_until_ready(f1(x))
    ref1 = ref_basic_conv2d(x, p1, 0)
    assert out1.shape == (N, Cout, H, W), out1.shape
    np.testing.assert_allclose(np.asarray(out1), np.asarray(ref1),
                               rtol=1e-4, atol=1e-4)

    print("KERNEL_OK")
</pallas_src>

<mosaic_0001>
module attributes {stable_mosaic.version = 11 : i64} {
  func.func @kernel(%arg0: i32, %arg1: memref<1x16x16x4xf32, #tpu.memory_space<vmem>>, %arg2: memref<36x32xf32, #tpu.memory_space<vmem>>, %arg3: memref<1x4xf32, #tpu.memory_space<vmem>>, %arg4: memref<1x4xf32, #tpu.memory_space<vmem>>, %arg5: memref<1x16x16x32xf32, #tpu.memory_space<vmem>>, %arg6: memref<1x18x18x4xf32, #tpu.memory_space<vmem>>) attributes {dimension_semantics = [#tpu.dimension_semantics<parallel>], iteration_bounds = array<i64: 2>, scalar_prefetch = 0 : i64, scratch_operands = 1 : i64, tpu.core_type = #tpu.core_type<tc>, window_params = [{transform_indices = @transform_0, window_bounds = array<i64: 1, 16, 16, 4>}, {pipeline_mode = #tpu.pipeline_mode<synchronous>, transform_indices = @transform_1, window_bounds = array<i64: 36, 32>}, {pipeline_mode = #tpu.pipeline_mode<synchronous>, transform_indices = @transform_2, window_bounds = array<i64: 1, 4>}, {pipeline_mode = #tpu.pipeline_mode<synchronous>, transform_indices = @transform_3, window_bounds = array<i64: 1, 4>}, {transform_indices = @transform_4, window_bounds = array<i64: 1, 16, 16, 32>}]} {
    %c0 = arith.constant 0 : index
    %c0_0 = arith.constant 0 : index
    %c0_1 = arith.constant 0 : index
    %c0_2 = arith.constant 0 : index
    %0 = vector.load %arg1[%c0, %c0_0, %c0_1, %c0_2] : memref<1x16x16x4xf32, #tpu.memory_space<vmem>>, vector<1x16x16x4xf32>
    %c0_3 = arith.constant 0 : index
    %c0_4 = arith.constant 0 : index
    %1 = vector.load %arg3[%c0_3, %c0_4] : memref<1x4xf32, #tpu.memory_space<vmem>>, vector<1x4xf32>
    %2 = vector.shape_cast %1 : vector<1x4xf32> to vector<1x1x1x4xf32>
    %c0_5 = arith.constant 0 : index
    %c0_6 = arith.constant 0 : index
    %3 = vector.load %arg4[%c0_5, %c0_6] : memref<1x4xf32, #tpu.memory_space<vmem>>, vector<1x4xf32>
    %4 = vector.shape_cast %3 : vector<1x4xf32> to vector<1x1x1x4xf32>
    %5 = vector.broadcast %2 : vector<1x1x1x4xf32> to vector<1x16x16x4xf32>
    %6 = arith.mulf %0, %5 : vector<1x16x16x4xf32>
    %7 = vector.broadcast %4 : vector<1x1x1x4xf32> to vector<1x16x16x4xf32>
    %8 = arith.addf %6, %7 : vector<1x16x16x4xf32>
    %cst = arith.constant 0.000000e+00 : f32
    %9 = vector.broadcast %cst : f32 to vector<1x16x16x4xf32>
    %10 = arith.maximumf %8, %9 : vector<1x16x16x4xf32>
    %cst_7 = arith.constant 0.000000e+00 : f32
    %11 = vector.broadcast %cst_7 : f32 to vector<1x18x18x4xf32>
    %c0_8 = arith.constant 0 : index
    %c0_9 = arith.constant 0 : index
    %c0_10 = arith.constant 0 : index
    %c0_11 = arith.constant 0 : index
    %12 = vector.load %arg6[%c0_8, %c0_9, %c0_10, %c0_11] : memref<1x18x18x4xf32, #tpu.memory_space<vmem>>, vector<1x18x18x4xf32>
    tpu.vector_store %arg6[%c0_8, %c0_9, %c0_10, %c0_11], %11 {strides = array<i32>} : memref<1x18x18x4xf32, #tpu.memory_space<vmem>>, vector<1x18x18x4xf32>,
    %c0_12 = arith.constant 0 : index
    %c1 = arith.constant 1 : index
    %c1_13 = arith.constant 1 : index
    %c0_14 = arith.constant 0 : index
    %13 = vector.load %arg6[%c0_12, %c1, %c1_13, %c0_14] : memref<1x18x18x4xf32, #tpu.memory_space<vmem>>, vector<1x16x16x4xf32>
    tpu.vector_store %arg6[%c0_12, %c1, %c1_13, %c0_14], %10 {strides = array<i32>} : memref<1x18x18x4xf32, #tpu.memory_space<vmem>>, vector<1x16x16x4xf32>,
    %c0_15 = arith.constant 0 : index
    %c0_16 = arith.constant 0 : index
    %c0_17 = arith.constant 0 : index
    %c0_18 = arith.constant 0 : index
    %14 = vector.load %arg6[%c0_15, %c0_16, %c0_17, %c0_18] : memref<1x18x18x4xf32, #tpu.memory_space<vmem>>, vector<1x16x16x4xf32>
    %c0_19 = arith.constant 0 : index
    %c0_20 = arith.constant 0 : index
    %c1_21 = arith.constant 1 : index
    %c0_22 = arith.constant 0 : index
    %15 = vector.load %arg6[%c0_19, %c0_20, %c1_21, %c0_22] : memref<1x18x18x4xf32, #tpu.memory_space<vmem>>, vector<1x16x16x4xf32>
    %c0_23 = arith.constant 0 : index
    %c0_24 = arith.constant 0 : index
    %c2 = arith.constant 2 : index
    %c0_25 = arith.constant 0 : index
    %16 = vector.load %arg6[%c0_23, %c0_24, %c2, %c0_25] : memref<1x18x18x4xf32, #tpu.memory_space<vmem>>, vector<1x16x16x4xf32>
    %c0_26 = arith.constant 0 : index
    %c1_27 = arith.constant 1 : index
    %c0_28 = arith.constant 0 : index
    %c0_29 = arith.constant 0 : index
    %17 = vector.load %arg6[%c0_26, %c1_27, %c0_28, %c0_29] : memref<1x18x18x4xf32, #tpu.memory_space<vmem>>, vector<1x16x16x4xf32>
    %c0_30 = arith.constant 0 : index
    %c1_31 = arith.constant 1 : index
    %c1_32 = arith.constant 1 : index
    %c0_33 = arith.constant 0 : index
    %18 = vector.load %arg6[%c0_30, %c1_31, %c1_32, %c0_33] : memref<1x18x18x4xf32, #tpu.memory_space<vmem>>, vector<1x16x16x4xf32>
    %c0_34 = arith.constant 0 : index
    %c1_35 = arith.constant 1 : index
    %c2_36 = arith.constant 2 : index
    %c0_37 = arith.constant 0 : index
    %19 = vector.load %arg6[%c0_34, %c1_35, %c2_36, %c0_37] : memref<1x18x18x4xf32, #tpu.memory_space<vmem>>, vector<1x16x16x4xf32>
    %c0_38 = arith.constant 0 : index
    %c2_39 = arith.constant 2 : index
    %c0_40 = arith.constant 0 : index
    %c0_41 = arith.constant 0 : index
    %20 = vector.load %arg6[%c0_38, %c2_39, %c0_40, %c0_41] : memref<1x18x18x4xf32, #tpu.memory_space<vmem>>, vector<1x16x16x4xf32>
    %c0_42 = arith.constant 0 : index
    %c2_43 = arith.constant 2 : index
    %c1_44 = arith.constant 1 : index
    %c0_45 = arith.constant 0 : index
    %21 = vector.load %arg6[%c0_42, %c2_43, %c1_44, %c0_45] : memref<1x18x18x4xf32, #tpu.memory_space<vmem>>, vector<1x16x16x4xf32>
    %c0_46 = arith.constant 0 : index
    %c2_47 = arith.constant 2 : index
    %c2_48 = arith.constant 2 : index
    %c0_49 = arith.constant 0 : index
    %22 = vector.load %arg6[%c0_46, %c2_47, %c2_48, %c0_49] : memref<1x18x18x4xf32, #tpu.memory_space<vmem>>, vector<1x16x16x4xf32>
    %23 = tpu.concatenate %14, %15, %16, %17, %18, %19, %20, %21, %22 in 3 : vector<1x16x16x4xf32>, vector<1x16x16x4xf32>, vector<1x16x16x4xf32>, vector<1x16x16x4xf32>, vector<1x16x16x4xf32>, vector<1x16x16x4xf32>, vector<1x16x16x4xf32>, vector<1x16x16x4xf32>, vector<1x16x16x4xf32> -> vector<1x16x16x36xf32>
    %24 = vector.shape_cast %23 : vector<1x16x16x36xf32> to vector<256x36xf32>
    %c0_50 = arith.constant 0 : index
    %c0_51 = arith.constant 0 : index
    %25 = vector.load %arg2[%c0_50, %c0_51] : memref<36x32xf32, #tpu.memory_space<vmem>>, vector<36x32xf32>
    %cst_52 = arith.constant dense<0.000000e+00> : vector<256x32xf32>
    %26 = tpu.matmul %24, %25, %cst_52 {dimension_numbers = #tpu.dot_dimension_numbers<[1], [0], [0], [1], [0, 0, 1, 1], [], []>} : vector<256x36xf32>, vector<36x32xf32>, vector<256x32xf32> -> vector<256x32xf32>
    %27 = vector.shape_cast %26 : vector<256x32xf32> to vector<1x16x16x32xf32>
    %c0_53 = arith.constant 0 : index
    %c0_54 = arith.constant 0 : index
    %c0_55 = arith.constant 0 : index
    %c0_56 = arith.constant 0 : index
    %28 = vector.load %arg5[%c0_53, %c0_54, %c0_55, %c0_56] : memref<1x16x16x32xf32, #tpu.memory_space<vmem>>, vector<1x16x16x32xf32>
    tpu.vector_store %arg5[%c0_53, %c0_54, %c0_55, %c0_56], %27 {strides = array<i32>} : memref<1x16x16x32xf32, #tpu.memory_space<vmem>>, vector<1x16x16x32xf32>,
    return
  }
  func.func @transform_0(%arg0: i32) -> (i32, i32, i32, i32) {
    %c0_i32 = arith.constant 0 : i32
    %c0_i32_0 = arith.constant 0 : i32
    %c0_i32_1 = arith.constant 0 : i32
    %c0_i32_2 = arith.constant 0 : i32
    return %arg0, %c0_i32, %c0_i32_0, %c0_i32_1 : i32, i32, i32, i32
  }
  func.func @transform_1(%arg0: i32) -> (i32, i32) {
    %c0_i32 = arith.constant 0 : i32
    %c0_i32_0 = arith.constant 0 : i32
    %c0_i32_1 = arith.constant 0 : i32
    return %c0_i32, %c0_i32_0 : i32, i32
  }
  func.func @transform_2(%arg0: i32) -> (i32, i32) {
    %c0_i32 = arith.constant 0 : i32
    %c0_i32_0 = arith.constant 0 : i32
    %c0_i32_1 = arith.constant 0 : i32
    return %c0_i32, %c0_i32_0 : i32, i32
  }
  func.func @transform_3(%arg0: i32) -> (i32, i32) {
    %c0_i32 = arith.constant 0 : i32
    %c0_i32_0 = arith.constant 0 : i32
    %c0_i32_1 = arith.constant 0 : i32
    return %c0_i32, %c0_i32_0 : i32, i32
  }
  func.func @transform_4(%arg0: i32) -> (i32, i32, i32, i32) {
    %c0_i32 = arith.constant 0 : i32
    %c0_i32_0 = arith.constant 0 : i32
    %c0_i32_1 = arith.constant 0 : i32
    %c0_i32_2 = arith.constant 0 : i32
    return %arg0, %c0_i32, %c0_i32_0, %c0_i32_1 : i32, i32, i32, i32
  }
}

</mosaic_0001>

<bundles_post_ra>
// kernel: _lambda_.1
= control target key start
LH: loop header
LB: loop body
LE: loop exit
PB: predicated region body
PF: predicated region fallthrough
CT: control target
= control target key end

     0   :  { %9 = vsyncpa [#allocation4], 0  ;;  %s4421_s0 = inlined_call_operand.vmem [shape: f32[2,16,16,4], index: 0, kind: input, shape index: {}]   ;;  %s4422_s1 = inlined_call_operand.vmem [shape: f32[36,32], index: 1, kind: input, shape index: {}]   ;;  %s4423_s2 = inlined_call_operand.vmem [shape: f32[1,4], index: 2, kind: input, shape index: {}]   ;;  %s4424_s3 = inlined_call_operand.vmem [shape: f32[1,4], index: 3, kind: input, shape index: {}]   ;;  %s4425_s4 = inlined_call_operand.hbm [shape: f32[2,16,16,32], index: 4, kind: output, shape index: {}]  }
   0x1   :  { %11 = vsyncpa [#allocation4 + $0x1], 0  ;;  %s2543_s15 = smov 0   ;;  %s2545_s16 = smov 0  }
   0x2   :  { %s2547_s17 = smov 0   ;;  %s2549_s18 = smov 0  }
   0x3 LB: > { %s2564_s19 = sadd.s32 4294967295, %s2506_s18   ;;  %s2326_s20 = sadd.s32 4294967294, %s2506_s18   ;;  %s2506_s18 = sphi %s2549_s18, %s4713_s18   ;;  %s2502_s17 = sphi %s2547_s17, %s4712_s17   ;;  %s2498_s16 = sphi %s2545_s16, %s4711_s16   ;;  %s2494_s15 = sphi %s2543_s15, %s4710_s15  }
   0x4   : > { %s2568_s21 = sadd.s32 1, %s2506_s18   ;;  %s113_s22 = sadd.s32 1, %s2502_s17 }
   0x5   : > { %s110_s23 = ssub.s32 %s2506_s18, %s2568_s21  ;;  %p123_p0 = scmp.ne.s32.totalorder %s2502_s17, %s2498_s16 }
   0x6   : > { %p111_p1 = scmp.eq.s32.totalorder %s110_s23, 0  ;;  %p124_p2 = scmp.eq.s32.totalorder %s2564_s19, 1 }
   0x7   : > { %p129_p3 = scmp.ne.s32.totalorder %s2498_s16, %s2494_s15  ;;  %p130_p4 = scmp.eq.s32.totalorder %s2326_s20, 1 }
   0x8   : > { %s2579_s24 = scalar_select %p111_p1, %s2502_s17, %s113_s22  }
   0x9   : > { %p2581_p5 = por %p124_p2, %p123_p0  ;;  %p2585_p6 = por %p130_p4, %p129_p3 }
   0xa   : > { %p2329_p7 = scmp.ge.s32.totalorder %s2506_s18, 1  ;;  %p165_p8 = scmp.lt.s32.totalorder %s2506_s18, 3 }
   0xc   : > { %p166_p9 = pnand %p2329_p7, %p165_p8 }
   0xe   : > { %169 = sbr.rel (%p166_p9) target bundleno = 1002 (0x3ea), region = 36 }
  0x13   : > { %vm332_vm0 = vcmask 31744   ;;  %v2508_v0 = vmov 0.0   ;;  %s2509_s27 = smov 4   ;;  %p191_p10 = scmp.lt.s32.totalorder %s2564_s19, 1  ;;  %vm335_vm1 = vcmask 25600   ;;  %vm1766_vm2 = vcmask 64512  }
  0x14   : > { %333 = vst.msk [vmem:[#allocation2] sm:$0xff] %vm332_vm0, %v2508_v0  ;;  %v2680_v2 = vld [vmem:[%s4423_s2] ss:$0 sm:$0xff]  ;;  %s2510_s11 = smov 8   ;;  %s2511_s12 = smov 12   ;;  %vm1799_vm3 = vcmask 97280  }
  0x15   : > { %334 = vst.msk [vmem:[#allocation2 + $0x8] sm:$0xff] %vm332_vm0, %v2508_v0  ;;  %s192_s28 = scalar_select %p191_p10, %s2564_s19, 1  ;;  %v2697_v7 = vld [vmem:[%s4424_s3] ss:$0 sm:$0xff]  ;;  %vm1832_vm4 = vcmask 130048   ;;  %vm1865_vm5 = vcmask 162816  }
  0x16   : > { %337 = vst.msk [vmem:[#allocation2 + $0x18] sm:$0xff] %vm332_vm0, %v2508_v0  ;;  %s2512_s13 = smov 16   ;;  %s2513_s14 = smov 20   ;;  %vm1898_vm6 = vcmask 195584   ;;  %vm2099_vm7 = vcmask 1043456   ;;  %vm1964_vm8 = vcmask 261120  }
  0x17   : > { %338 = vst.msk [vmem:[#allocation2 + $0x20] sm:$0xff] %vm332_vm0, %v2508_v0  ;;  %s2371_s29 = sshll.u32 %s192_s28, 8  ;;  %s2514_s20 = smov 24   ;;  %vm1931_vm9 = vcmask 228352   ;;  %vm2002_vm10 = vcmask 293888  }
  0x18   : > { %340 = vst.msk [vmem:[#allocation2 + $0x30] sm:$0xff] %vm332_vm0, %v2508_v0  ;;  %s2671_s6 = scalar_lea.vmem %s4421_s0, %s2371_s29  ;;  %s2515_s22 = smov 28  }
  0x19   : > { %341 = vst.msk [vmem:[#allocation2 + $0x38] sm:$0xff] %vm332_vm0, %v2508_v0  ;;  %v198_v3 = vld [vmem:[%s2671_s6 + $0x10] sm:$0xff]  ;;  %v196_v4 = vld [vmem:[%s2671_s6] sm:$0xff]  ;;  %v199_v8 = vld [vmem:[%s2671_s6 + $0x18] sm:$0xff]  ;;  %s2516_s23 = smov 32   ;;  %s2464_s8 = scalar_lea.hbm %s4425_s4, 512 }
  0x1a   : > { %343 = vst.msk [vmem:[#allocation2 + $0x48] sm:$0xff] %vm332_vm0, %v2508_v0  ;;  %v200_v5 = vld [vmem:[%s2671_s6 + $0x20] sm:$0xff]  ;;  %v235_v6 = vmul.f32 %v2680_v2, %v198_v3  ;;  %v233_v10 = vmul.f32 %v2680_v2, %v196_v4  ;;  %v197_v11 = vld [vmem:[%s2671_s6 + $0x8] sm:$0xff]  ;;  %v203_v13 = vld [vmem:[%s2671_s6 + $0x38] sm:$0xff]  ;;  %v236_v14 = vmul.f32 %v2680_v2, %v199_v8 }
  0x1b   : > { %344 = vst.msk [vmem:[#allocation2 + $0x50] sm:$0xff] %vm332_vm0, %v2508_v0  ;;  %v237_v12 = vmul.f32 %v2680_v2, %v200_v5  ;;  %v202_v15 = vld [vmem:[%s2671_s6 + $0x30] sm:$0xff]  ;;  %v234_v17 = vmul.f32 %v2680_v2, %v197_v11  ;;  %v201_v18 = vld [vmem:[%s2671_s6 + $0x28] sm:$0xff]  ;;  %v240_v20 = vmul.f32 %v2680_v2, %v203_v13  ;;  %v204_v27 = vld [vmem:[%s2671_s6 + $0x40] sm:$0xff] }
  0x1c   : > { %v453_v1 = vld [vmem:[#allocation2 + $0x1] sm:$0xff]  ;;  %346 = vst.msk [vmem:[#allocation2 + $0x60] sm:$0xff] %vm332_vm0, %v2508_v0  ;;  %v270_v16 = vadd.f32 %v2697_v7, %v235_v6  ;;  %v268_v19 = vadd.f32 %v2697_v7, %v233_v10  ;;  %v206_v21 = vld [vmem:[%s2671_s6 + $0x50] sm:$0xff]  ;;  %v239_v23 = vmul.f32 %v2680_v2, %v202_v15  ;;  %v271_v25 = vadd.f32 %v2697_v7, %v236_v14  ;;  %v207_v39 = vld [vmem:[%s2671_s6 + $0x58] sm:$0xff] }
  0x1d   : > { %742 = vrot.lane.b32.xlu0 %v453_v1, %s2509_s27  ;;  %347 = vst.msk [vmem:[#allocation2 + $0x68] sm:$0xff] %vm332_vm0, %v2508_v0  ;;  %v272_v22 = vadd.f32 %v2697_v7, %v237_v12  ;;  %v205_v24 = vld [vmem:[%s2671_s6 + $0x48] sm:$0xff]  ;;  %v238_v26 = vmul.f32 %v2680_v2, %v201_v18  ;;  %v269_v29 = vadd.f32 %v2697_v7, %v234_v17  ;;  %v208_v35 = vld [vmem:[%s2671_s6 + $0x60] sm:$0xff]  ;;  %v211_v53 = vld [vmem:[%s2671_s6 + $0x78] sm:$0xff] }
  0x1e   : > { %349 = vst.msk [vmem:[#allocation2 + $0x78] sm:$0xff] %vm332_vm0, %v2508_v0  ;;  %v302_v28 = vmax.f32 %v270_v16, 0.0  ;;  %v243_v30 = vmul.f32 %v2680_v2, %v206_v21  ;;  %v209_v31 = vld [vmem:[%s2671_s6 + $0x68] sm:$0xff]  ;;  %v300_v32 = vmax.f32 %v268_v19, 0.0  ;;  %v275_v33 = vadd.f32 %v2697_v7, %v240_v20  ;;  %v212_v43 = vld [vmem:[%s2671_s6 + $0x80] sm:$0xff]  ;;  %v210_v54 = vld [vmem:[%s2671_s6 + $0x70] sm:$0xff] }
  0x1f   : > { %350 = vst.msk [vmem:[#allocation2 + $0x80] sm:$0xff] %vm332_vm0, %v2508_v0  ;;  %v242_v34 = vmul.f32 %v2680_v2, %v205_v24  ;;  %v304_v36 = vmax.f32 %v272_v22, 0.0  ;;  %v274_v37 = vadd.f32 %v2697_v7, %v239_v23  ;;  %v241_v38 = vmul.f32 %v2680_v2, %v204_v27  ;;  %v215_v1 = vld [vmem:[%s2671_s6 + $0x98] sm:$0xff]  ;;  %v214_v15 = vld [vmem:[%s2671_s6 + $0x90] sm:$0xff]  ;;  %v213_v16 = vld [vmem:[%s2671_s6 + $0x88] sm:$0xff] }
  0x20   : > { %352 = vst.msk [vmem:[#allocation2 + $0x90] sm:$0xff] %vm332_vm0, %v2508_v0  ;;  %v303_v40 = vmax.f32 %v271_v25, 0.0  ;;  %v273_v41 = vadd.f32 %v2697_v7, %v238_v26  ;;  %v246_v42 = vmul.f32 %v2680_v2, %v209_v31  ;;  %v301_v44 = vmax.f32 %v269_v29, 0.0  ;;  %v218_v26 = vld [vmem:[%s2671_s6 + $0xb0] sm:$0xff] }
  0x21   : > { %353 = vst.msk [vmem:[#allocation2 + $0x98] sm:$0xff] %vm332_vm0, %v2508_v0  ;;  %v278_v45 = vadd.f32 %v2697_v7, %v243_v30  ;;  %v245_v46 = vmul.f32 %v2680_v2, %v208_v35  ;;  %v307_v47 = vmax.f32 %v275_v33, 0.0  ;;  %v277_v48 = vadd.f32 %v2697_v7, %v242_v34  ;;  %v216_v33 = vld [vmem:[%s2671_s6 + $0xa0] sm:$0xff] }
  0x22   : > { %355 = vst.msk [vmem:[#allocation2 + $0xa8] sm:$0xff] %vm332_vm0, %v2508_v0  ;;  %v244_v49 = vmul.f32 %v2680_v2, %v207_v39  ;;  %v306_v50 = vmax.f32 %v274_v37, 0.0  ;;  %v276_v51 = vadd.f32 %v2697_v7, %v241_v38  ;;  %v249_v52 = vmul.f32 %v2680_v2, %v212_v43 }
  0x23   : > { %356 = vst.msk [vmem:[#allocation2 + $0xb0] sm:$0xff] %vm332_vm0, %v2508_v0  ;;  %v305_v55 = vmax.f32 %v273_v41, 0.0  ;;  %v281_v56 = vadd.f32 %v2697_v7, %v246_v42  ;;  %v248_v57 = vmul.f32 %v2680_v2, %v211_v53  ;;  %v310_v58 = vmax.f32 %v278_v45, 0.0  ;;  %v221_v41 = vld [vmem:[%s2671_s6 + $0xc8] sm:$0xff] }
  0x24   : > { %358 = vst.msk [vmem:[#allocation2 + $0xc0] sm:$0xff] %vm332_vm0, %v2508_v0  ;;  %v280_v59 = vadd.f32 %v2697_v7, %v245_v46  ;;  %v247_v60 = vmul.f32 %v2680_v2, %v210_v54  ;;  %v309_v61 = vmax.f32 %v277_v48, 0.0  ;;  %v279_v62 = vadd.f32 %v2697_v7, %v244_v49  ;;  %v219_v48 = vld [vmem:[%s2671_s6 + $0xb8] sm:$0xff] }
  0x25   : > { %359 = vst.msk [vmem:[#allocation2 + $0xc8] sm:$0xff] %vm332_vm0, %v2508_v0  ;;  %v308_v63 = vmax.f32 %v276_v51, 0.0  ;;  %v313_v4 = vmax.f32 %v281_v56, 0.0  ;;  %v283_v5 = vadd.f32 %v2697_v7, %v248_v57  ;;  %v252_v6 = vmul.f32 %v2680_v2, %v215_v1  ;;  %v224_v56 = vld [vmem:[%s2671_s6 + $0xe0] sm:$0xff] }
  0x26   : > { %361 = vst.msk [vmem:[#allocation2 + $0xd8] sm:$0xff] %vm332_vm0, %v2508_v0  ;;  %v282_v10 = vadd.f32 %v2697_v7, %v247_v60  ;;  %v311_v12 = vmax.f32 %v279_v62, 0.0  ;;  %v251_v18 = vmul.f32 %v2680_v2, %v214_v15  ;;  %v250_v19 = vmul.f32 %v2680_v2, %v213_v16  ;;  %v223_v62 = vld [vmem:[%s2671_s6 + $0xd8] sm:$0xff]  ;;  %v225_v15 = vld [vmem:[%s2671_s6 + $0xe8] sm:$0xff] }
  0x27   : > { %362 = vst.msk [vmem:[#allocation2 + $0xe0] sm:$0xff] %vm332_vm0, %v2508_v0  ;;  %v287_v13 = vadd.f32 %v2697_v7, %v252_v6  ;;  %v315_v17 = vmax.f32 %v283_v5, 0.0  ;;  %v255_v30 = vmul.f32 %v2680_v2, %v218_v26  ;;  %v258_v45 = vmul.f32 %v2680_v2, %v221_v41 }
  0x28   : > { %364 = vst.msk [vmem:[#allocation2 + $0xf0] sm:$0xff] %vm332_vm0, %v2508_v0  ;;  %v314_v20 = vmax.f32 %v282_v10, 0.0  ;;  %v286_v23 = vadd.f32 %v2697_v7, %v251_v18  ;;  %v285_v24 = vadd.f32 %v2697_v7, %v250_v19  ;;  %v256_v51 = vmul.f32 %v2680_v2, %v219_v48 }
  0x29   : > { %365 = vst.msk [vmem:[#allocation2 + $0xf8] sm:$0xff] %vm332_vm0, %v2508_v0  ;;  %v319_v22 = vmax.f32 %v287_v13, 0.0  ;;  %v290_v31 = vadd.f32 %v2697_v7, %v255_v30  ;;  %v293_v46 = vadd.f32 %v2697_v7, %v258_v45  ;;  %v261_v60 = vmul.f32 %v2680_v2, %v224_v56 }
  0x2a   : > { %367 = vst.msk [vmem:[#allocation2 + $0x108] sm:$0xff] %vm332_vm0, %v2508_v0  ;;  %v317_v29 = vmax.f32 %v285_v24, 0.0  ;;  %v291_v54 = vadd.f32 %v2697_v7, %v256_v51  ;;  %v260_v1 = vmul.f32 %v2680_v2, %v223_v62  ;;  %v262_v16 = vmul.f32 %v2680_v2, %v225_v15 }
  0x2b   : > { %368 = vst.msk [vmem:[#allocation2 + $0x110] sm:$0xff] %vm332_vm0, %v2508_v0  ;;  %v322_v34 = vmax.f32 %v290_v31, 0.0  ;;  %v325_v49 = vmax.f32 %v293_v46, 0.0 }
  0x2c   : > { %370 = vst.msk [vmem:[#allocation2 + $0x120] sm:$0xff] %vm332_vm0, %v2508_v0  ;;  %v295_v6 = vadd.f32 %v2697_v7, %v260_v1  ;;  %v297_v18 = vadd.f32 %v2697_v7, %v262_v16 }
  0x2d   : > { %371 = vst.msk [vmem:[#allocation2 + $0x128] sm:$0xff] %vm332_vm0, %v2508_v0 }
  0x2e   : > { %373 = vst.msk [vmem:[#allocation2 + $0x138] sm:$0xff] %vm332_vm0, %v2508_v0  ;;  %v327_v13 = vmax.f32 %v295_v6, 0.0 }
  0x2f   : > { %374 = vst.msk [vmem:[#allocation2 + $0x140] sm:$0xff] %vm332_vm0, %v2508_v0 }
  0x30   : > { %376 = vst.msk [vmem:[#allocation2 + $0x150] sm:$0xff] %vm332_vm0, %v2508_v0 }
  0x31   : > { %377 = vst.msk [vmem:[#allocation2 + $0x158] sm:$0xff] %vm332_vm0, %v2508_v0 }
  0x32   : > { %379 = vst.msk [vmem:[#allocation2 + $0x168] sm:$0xff] %vm332_vm0, %v2508_v0 }
  0x33   : > { %380 = vst.msk [vmem:[#allocation2 + $0x170] sm:$0xff] %vm332_vm0, %v2508_v0 }
  0x34   : > { %382 = vst.msk [vmem:[#allocation2 + $0x180] sm:$0xff] %vm332_vm0, %v2508_v0 }
  0x35   : > { %383 = vst.msk [vmem:[#allocation2 + $0x188] sm:$0xff] %vm332_vm0, %v2508_v0 }
  0x36   : > { %385 = vst.msk [vmem:[#allocation2 + $0x198] sm:$0xff] %vm332_vm0, %v2508_v0 }
  0x37   : > { %386 = vst.msk [vmem:[#allocation2 + $0x1a0] sm:$0xff] %vm332_vm0, %v2508_v0 }
  0x38   : > { %336 = vst.msk [vmem:[#allocation2 + $0x10] sm:$0x3] %vm335_vm1, %v2508_v0 }
  0x39   : > { %339 = vst.msk [vmem:[#allocation2 + $0x28] sm:$0x3] %vm335_vm1, %v2508_v0 }
  0x3a   : > { %342 = vst.msk [vmem:[#allocation2 + $0x40] sm:$0x3] %vm335_vm1, %v2508_v0 }
  0x3b   : > { %345 = vst.msk [vmem:[#allocation2 + $0x58] sm:$0x3] %vm335_vm1, %v2508_v0 }
  0x3c   : > { %348 = vst.msk [vmem:[#allocation2 + $0x70] sm:$0x3] %vm335_vm1, %v2508_v0 }
  0x3d   : > { %351 = vst.msk [vmem:[#allocation2 + $0x88] sm:$0x3] %vm335_vm1, %v2508_v0 }
  0x3e   : > { %354 = vst.msk [vmem:[#allocation2 + $0xa0] sm:$0x3] %vm335_vm1, %v2508_v0 }
  0x3f   : > { %v454_v9 = vld [vmem:[#allocation2 + $0x9] sm:$0xff]  ;;  %357 = vst.msk [vmem:[#allocation2 + $0xb8] sm:$0x3] %vm335_vm1, %v2508_v0 }
  0x40   : > { %744 = vrot.lane.b32.xlu0 %v454_v9, %s2509_s27  ;;  %360 = vst.msk [vmem:[#allocation2 + $0xd0] sm:$0x3] %vm335_vm1, %v2508_v0  ;;  %v312_v9 = vmax.f32 %v280_v59, 0.0  ;;  %v323_v59 = vmax.f32 %v291_v54, 0.0 }
  0x41   : > { %363 = vst.msk [vmem:[#allocation2 + $0xe8] sm:$0x3] %vm335_vm1, %v2508_v0 }
  0x42   : > { %366 = vst.msk [vmem:[#allocation2 + $0x100] sm:$0x3] %vm335_vm1, %v2508_v0 }
  0x43   : > { %369 = vst.msk [vmem:[#allocation2 + $0x118] sm:$0x3] %vm335_vm1, %v2508_v0 }
  0x44   : > { %372 = vst.msk [vmem:[#allocation2 + $0x130] sm:$0x3] %vm335_vm1, %v2508_v0 }
  0x45   : > { %375 = vst.msk [vmem:[#allocation2 + $0x148] sm:$0x3] %vm335_vm1, %v2508_v0 }
  0x46   : > { %378 = vst.msk [vmem:[#allocation2 + $0x160] sm:$0x3] %vm335_vm1, %v2508_v0 }
  0x47   : > { %381 = vst.msk [vmem:[#allocation2 + $0x178] sm:$0x3] %vm335_vm1, %v2508_v0 }
  0x48   : > { %384 = vst.msk [vmem:[#allocation2 + $0x190] sm:$0x3] %vm335_vm1, %v2508_v0 }
  0x49   : > { %387 = vst.msk [vmem:[#allocation2 + $0x1a8] sm:$0x3] %vm335_vm1, %v2508_v0  ;;  %v284_v0 = vadd.f32 %v2697_v7, %v249_v52 }
  0x4a   : > { %391 = vst.msk [vmem:[#allocation2 + $0x31] sm:$0xff] %vm332_vm0, %v302_v28  ;;  %v318_v28 = vmax.f32 %v286_v23, 0.0 }
  0x4b   : > { %389 = vst.msk [vmem:[#allocation2 + $0x19] sm:$0xff] %vm332_vm0, %v300_v32  ;;  %v316_v14 = vmax.f32 %v284_v0, 0.0  ;;  %v217_v32 = vld [vmem:[%s2671_s6 + $0xa8] sm:$0xff] }
  0x4c   : > { %393 = vst.msk [vmem:[#allocation2 + $0x49] sm:$0xff] %vm332_vm0, %v304_v36  ;;  %v254_v35 = vmul.f32 %v2680_v2, %v217_v32  ;;  %v253_v36 = vmul.f32 %v2680_v2, %v216_v33 }
  0x4d   : > { %392 = vst.msk [vmem:[#allocation2 + $0x39] sm:$0xff] %vm332_vm0, %v303_v40 }
  0x4e   : > { %390 = vst.msk [vmem:[#allocation2 + $0x21] sm:$0xff] %vm332_vm0, %v301_v44  ;;  %v289_v38 = vadd.f32 %v2697_v7, %v254_v35  ;;  %v288_v39 = vadd.f32 %v2697_v7, %v253_v36  ;;  %v486_v36 = vld [vmem:[#allocation2 + $0xa] sm:$0xff] }
  0x4f   : > { %396 = vst.msk [vmem:[#allocation2 + $0x69] sm:$0xff] %vm332_vm0, %v307_v47  ;;  %v220_v47 = vld [vmem:[%s2671_s6 + $0xc0] sm:$0xff] }
  0x50   : > { %395 = vst.msk [vmem:[#allocation2 + $0x61] sm:$0xff] %vm332_vm0, %v306_v50  ;;  %v321_v43 = vmax.f32 %v289_v38, 0.0  ;;  %v320_v44 = vmax.f32 %v288_v39, 0.0  ;;  %v257_v50 = vmul.f32 %v2680_v2, %v220_v47  ;;  %v485_v38 = vld [vmem:[#allocation2 + $0x2] sm:$0xff] }
  0x51   : > { %v2775_v3 = vld [vmem:[#allocation2 + $0x31] sm:$0xff]  ;;  %394 = vst.msk [vmem:[#allocation2 + $0x51] sm:$0xff] %vm332_vm0, %v305_v55 }
  0x52   : > { %750 = vrot.lane.b32.xlu2 %v2775_v3, %s2509_s27  ;;  %v2782_v8 = vld [vmem:[#allocation2 + $0x19] sm:$0xff]  ;;  %399 = vst.msk [vmem:[#allocation2 + $0x91] sm:$0xff] %vm332_vm0, %v310_v58  ;;  %v292_v53 = vadd.f32 %v2697_v7, %v257_v50 }
  0x53   : > { %746 = vrot.lane.b32.xlu1 %v2782_v8, %s2509_s27  ;;  %v2788_v11 = vld [vmem:[#allocation2 + $0x49] sm:$0xff]  ;;  %398 = vst.msk [vmem:[#allocation2 + $0x81] sm:$0xff] %vm332_vm0, %v309_v61  ;;  %v296_v61 = vadd.f32 %v2697_v7, %v261_v60 }
  0x54   : > { %754 = vrot.lane.b32.xlu0 %v2788_v11, %s2509_s27  ;;  %397 = vst.msk [vmem:[#allocation2 + $0x79] sm:$0xff] %vm332_vm0, %v308_v63  ;;  %v2801_v21 = vld [vmem:[#allocation2 + $0x39] sm:$0xff]  ;;  %v324_v58 = vmax.f32 %v292_v53, 0.0  ;;  %v222_v63 = vld [vmem:[%s2671_s6 + $0xd0] sm:$0xff] }
  0x55   : > { %402 = vst.msk [vmem:[#allocation2 + $0xb1] sm:$0xff] %vm332_vm0, %v313_v4  ;;  %v2806_v25 = vld [vmem:[#allocation2 + $0x21] sm:$0xff]  ;;  %v328_v0 = vmax.f32 %v296_v61, 0.0  ;;  %v259_v4 = vmul.f32 %v2680_v2, %v222_v63  ;;  %v2957_v41 = vld [vmem:[#allocation2 + $0x32] sm:$0xff] }
  0x56   : > { %401 = vst.msk [vmem:[#allocation2 + $0xa9] sm:$0xff] %vm332_vm0, %v312_v9  ;;  %v2810_v27 = vld [vmem:[#allocation2 + $0x69] sm:$0xff]  ;;  %v2980_v48 = vld [vmem:[#allocation2 + $0x3a] sm:$0xff] }
  0x57   : > { %400 = vst.msk [vmem:[#allocation2 + $0x99] sm:$0xff] %vm332_vm0, %v311_v12  ;;  %v2829_v37 = vld [vmem:[#allocation2 + $0x61] sm:$0xff]  ;;  %v294_v9 = vadd.f32 %v2697_v7, %v259_v4  ;;  %v2994_v53 = vld [vmem:[#allocation2 + $0x6a] sm:$0xff] }
  0x58   : > { %405 = vst.msk [vmem:[#allocation2 + $0xd9] sm:$0xff] %vm332_vm0, %v316_v14  ;;  %v2834_v40 = vld [vmem:[#allocation2 + $0x51] sm:$0xff]  ;;  %v2996_v54 = vld [vmem:[#allocation2 + $0x62] sm:$0xff] }
  0x59   : > { %404 = vst.msk [vmem:[#allocation2 + $0xc9] sm:$0xff] %vm332_vm0, %v315_v17  ;;  %v2837_v42 = vld [vmem:[#allocation2 + $0x91] sm:$0xff]  ;;  %v326_v14 = vmax.f32 %v294_v9, 0.0 }
  0x5a   : > { %752 = vrot.lane.b32.xlu2 %v2801_v21, %s2509_s27  ;;  %403 = vst.msk [vmem:[#allocation2 + $0xc1] sm:$0xff] %vm332_vm0, %v314_v20  ;;  %v2853_v52 = vld [vmem:[#allocation2 + $0x81] sm:$0xff]  ;;  %v2968_v45 = vld [vmem:[#allocation2 + $0x52] sm:$0xff]  ;;  %v2978_v47 = vld [vmem:[#allocation2 + $0x4a] sm:$0xff] }
  0x5b   : > { %748 = vrot.lane.b32.xlu1 %v2806_v25, %s2509_s27  ;;  %408 = vst.msk [vmem:[#allocation2 + $0xf9] sm:$0xff] %vm332_vm0, %v319_v22  ;;  %v2858_v55 = vld [vmem:[#allocation2 + $0x79] sm:$0xff]  ;;  %v329_v22 = vmax.f32 %v297_v18, 0.0  ;;  %v3012_v61 = vld [vmem:[#allocation2 + $0x82] sm:$0xff] }
  0x5c   : > { %760 = vrot.lane.b32.xlu0 %v2810_v27, %s2509_s27  ;;  %407 = vst.msk [vmem:[#allocation2 + $0xf1] sm:$0xff] %vm332_vm0, %v318_v28  ;;  %v2861_v57 = vld [vmem:[#allocation2 + $0xb1] sm:$0xff] }
  0x5d   : > { %406 = vst.msk [vmem:[#allocation2 + $0xe1] sm:$0xff] %vm332_vm0, %v317_v29  ;;  %v2877_v5 = vld [vmem:[#allocation2 + $0xa9] sm:$0xff]  ;;  %v3028_v4 = vld [vmem:[#allocation2 + $0xb2] sm:$0xff] }
  0x5e   : > { %411 = vst.msk [vmem:[#allocation2 + $0x121] sm:$0xff] %vm332_vm0, %v322_v34  ;;  %v2882_v10 = vld [vmem:[#allocation2 + $0x99] sm:$0xff]  ;;  %v3030_v6 = vld [vmem:[#allocation2 + $0xaa] sm:$0xff] }
  0x5f   : > { %410 = vst.msk [vmem:[#allocation2 + $0x111] sm:$0xff] %vm332_vm0, %v321_v43  ;;  %v2884_v12 = vld [vmem:[#allocation2 + $0xd9] sm:$0xff]  ;;  %v2964_v43 = vld [vmem:[#allocation2 + $0x22] sm:$0xff] }
  0x60   : > { %409 = vst.msk [vmem:[#allocation2 + $0x109] sm:$0xff] %vm332_vm0, %v320_v44  ;;  %v2896_v17 = vld [vmem:[#allocation2 + $0xc9] sm:$0xff]  ;;  %v2966_v44 = vld [vmem:[#allocation2 + $0x1a] sm:$0xff]  ;;  %v3010_v60 = vld [vmem:[#allocation2 + $0x92] sm:$0xff] }
  0x61   : > { %414 = vst.msk [vmem:[#allocation2 + $0x141] sm:$0xff] %vm332_vm0, %v325_v49  ;;  %v2899_v19 = vld [vmem:[#allocation2 + $0xc1] sm:$0xff]  ;;  %v3048_v18 = vld [vmem:[#allocation2 + $0xca] sm:$0xff] }
  0x62   : > { %758 = vrot.lane.b32.xlu2 %v2829_v37, %s2509_s27  ;;  %413 = vst.msk [vmem:[#allocation2 + $0x139] sm:$0xff] %vm332_vm0, %v324_v58  ;;  %v2901_v20 = vld [vmem:[#allocation2 + $0xf9] sm:$0xff]  ;;  %v3014_v62 = vld [vmem:[#allocation2 + $0xc2] sm:$0xff] }
  0x63   : > { %756 = vrot.lane.b32.xlu1 %v2834_v40, %s2509_s27  ;;  %412 = vst.msk [vmem:[#allocation2 + $0x129] sm:$0xff] %vm332_vm0, %v323_v59  ;;  %v2910_v23 = vld [vmem:[#allocation2 + $0xf1] sm:$0xff]  ;;  %v2982_v49 = vld [vmem:[#allocation2 + $0x7a] sm:$0xff] }
  0x64   : > { %766 = vrot.lane.b32.xlu0 %v2837_v42, %s2509_s27  ;;  %417 = vst.msk [vmem:[#allocation2 + $0x169] sm:$0xff] %vm332_vm0, %v328_v0  ;;  %v2912_v24 = vld [vmem:[#allocation2 + $0xe1] sm:$0xff] }
  0x65   : > { %416 = vst.msk [vmem:[#allocation2 + $0x159] sm:$0xff] %vm332_vm0, %v327_v13  ;;  %v2914_v26 = vld [vmem:[#allocation2 + $0x121] sm:$0xff] }
  0x66   : > { %415 = vst.msk [vmem:[#allocation2 + $0x151] sm:$0xff] %vm332_vm0, %v326_v14  ;;  %v2922_v28 = vld [vmem:[#allocation2 + $0x111] sm:$0xff]  ;;  %v2998_v56 = vld [vmem:[#allocation2 + $0x9a] sm:$0xff]  ;;  %v3032_v9 = vld [vmem:[#allocation2 + $0xe2] sm:$0xff] }
  0x67   : > { %418 = vst.msk [vmem:[#allocation2 + $0x171] sm:$0xff] %vm332_vm0, %v329_v22  ;;  %v2924_v29 = vld [vmem:[#allocation2 + $0x109] sm:$0xff]  ;;  %v3046_v16 = vld [vmem:[#allocation2 + $0xda] sm:$0xff] }
  0x68   : > { %v2926_v30 = vld [vmem:[#allocation2 + $0x141] sm:$0xff]  ;;  %4483 = vst [vmem:[#allocation14_spill] sm:$0xff] %v3032_v9  ;;  %v3050_v22 = vld [vmem:[#allocation2 + $0x10a] sm:$0xff] }
  0x69   : > { %v2934_v31 = vld [vmem:[#allocation2 + $0x139] sm:$0xff]  ;;  %4487 = vst [vmem:[#allocation18_spill] sm:$0xff] %v3050_v22 }
  0x6a   : > { %764 = vrot.lane.b32.xlu2 %v2853_v52, %s2509_s27  ;;  %v2936_v32 = vld [vmem:[#allocation2 + $0x129] sm:$0xff] }
  0x6b   : > { %762 = vrot.lane.b32.xlu1 %v2858_v55, %s2509_s27  ;;  %v2938_v33 = vld [vmem:[#allocation2 + $0x169] sm:$0xff] }
  0x6c   : > { %772 = vrot.lane.b32.xlu0 %v2861_v57, %s2509_s27  ;;  %v2946_v34 = vld [vmem:[#allocation2 + $0x159] sm:$0xff] }
  0x6d   : > { %v2948_v35 = vld [vmem:[#allocation2 + $0x151] sm:$0xff] }
  0x6e   : > { %v2955_v39 = vld [vmem:[#allocation2 + $0x171] sm:$0xff] }
  0x72   : > { %770 = vrot.lane.b32.xlu2 %v2877_v5, %s2509_s27 }
  0x73   : > { %768 = vrot.lane.b32.xlu1 %v2882_v10, %s2509_s27 }
  0x74   : > { %778 = vrot.lane.b32.xlu0 %v2884_v12, %s2509_s27 }
  0x7a   : > { %776 = vrot.lane.b32.xlu2 %v2896_v17, %s2509_s27 }
  0x7b   : > { %774 = vrot.lane.b32.xlu1 %v2899_v19, %s2509_s27 }
  0x7c   : > { %784 = vrot.lane.b32.xlu0 %v2901_v20, %s2509_s27 }
  0x82   : > { %782 = vrot.lane.b32.xlu2 %v2910_v23, %s2509_s27 }
  0x83   : > { %780 = vrot.lane.b32.xlu1 %v2912_v24, %s2509_s27 }
  0x84   : > { %790 = vrot.lane.b32.xlu0 %v2914_v26, %s2509_s27 }
  0x8a   : > { %788 = vrot.lane.b32.xlu2 %v2922_v28, %s2509_s27 }
  0x8b   : > { %786 = vrot.lane.b32.xlu1 %v2924_v29, %s2509_s27 }
  0x8c   : > { %796 = vrot.lane.b32.xlu0 %v2926_v30, %s2509_s27 }
  0x8f   : > { %v2986_v50 = vpop.permute.xlu0 %742 }
  0x90   : > { %4476 = vst [vmem:[#allocation7_spill] sm:$0xff] %v2986_v50 }
  0x92   : > { %794 = vrot.lane.b32.xlu2 %v2934_v31, %s2509_s27 }
  0x93   : > { %792 = vrot.lane.b32.xlu1 %v2936_v32, %s2509_s27 }
  0x94   : > { %802 = vrot.lane.b32.xlu0 %v2938_v33, %s2509_s27 }
  0x9a   : > { %800 = vrot.lane.b32.xlu2 %v2946_v34, %s2509_s27 }
  0x9b   : > { %798 = vrot.lane.b32.xlu1 %v2948_v35, %s2509_s27 }
  0x9c   : > { %872 = vrot.lane.b32.xlu0 %v486_v36, %s2510_s11 }
  0xa2   : > { %870 = vrot.lane.b32.xlu2 %v485_v38, %s2510_s11 }
  0xa3   : > { %804 = vrot.lane.b32.xlu1 %v2955_v39, %s2509_s27 }
  0xa4   : > { %878 = vrot.lane.b32.xlu0 %v2957_v41, %s2510_s11 }
  0xaa   : > { %876 = vrot.lane.b32.xlu2 %v2964_v43, %s2510_s11 }
  0xab   : > { %874 = vrot.lane.b32.xlu1 %v2966_v44, %s2510_s11 }
  0xac   : > { %v2974_v46 = vpop.permute.xlu2 %750  ;;  %884 = vrot.lane.b32.xlu0 %v2968_v45, %s2510_s11 }
  0xad   : > { %4475 = vst [vmem:[#allocation6_spill] sm:$0xff] %v2974_v46  ;;  %v3084_v46 = vld [vmem:[#allocation2 + $0x112] sm:$0xff] }
  0xae   : > { %4496 = vst [vmem:[#allocation27_spill] sm:$0xff] %v3084_v46 }
  0xb2   : > { %882 = vrot.lane.b32.xlu2 %v2978_v47, %s2510_s11  ;;  %v3008_v59 = vpop.permute.xlu0 %744 }
  0xb3   : > { %880 = vrot.lane.b32.xlu1 %v2980_v48, %s2510_s11  ;;  %4479 = vst [vmem:[#allocation10_spill] sm:$0xff] %v3008_v59  ;;  %v3086_v59 = vld [vmem:[#allocation2 + $0x152] sm:$0xff] }
  0xb4   : > { %v2990_v51 = vpop.permute.xlu2 %752  ;;  %890 = vrot.lane.b32.xlu0 %v2982_v49, %s2510_s11  ;;  %4497 = vst [vmem:[#allocation28_spill] sm:$0xff] %v3086_v59 }
  0xb5   : > { %4477 = vst [vmem:[#allocation8_spill] sm:$0xff] %v2990_v51 }
  0xba   : > { %888 = vrot.lane.b32.xlu2 %v2994_v53, %s2510_s11 }
  0xbb   : > { %886 = vrot.lane.b32.xlu1 %v2996_v54, %s2510_s11 }
  0xbc   : > { %v3004_v58 = vpop.permute.xlu2 %758  ;;  %896 = vrot.lane.b32.xlu0 %v2998_v56, %s2510_s11 }
  0xbd   : > { %4478 = vst [vmem:[#allocation9_spill] sm:$0xff] %v3004_v58  ;;  %v3064_v58 = vld [vmem:[#allocation2 + $0xfa] sm:$0xff] }
  0xc2   : > { %894 = vrot.lane.b32.xlu2 %v3010_v60, %s2510_s11 }
  0xc3   : > { %892 = vrot.lane.b32.xlu1 %v3012_v61, %s2510_s11 }
  0xc4   : > { %v3020_v63 = vpop.permute.xlu2 %764  ;;  %902 = vrot.lane.b32.xlu0 %v3014_v62, %s2510_s11 }
  0xc5   : > { %4480 = vst [vmem:[#allocation11_spill] sm:$0xff] %v3020_v63  ;;  %v3024_v0 = vpop.permute.xlu1 %746  ;;  %v3066_v63 = vld [vmem:[#allocation2 + $0xf2] sm:$0xff] }
  0xc6   : > { %4481 = vst [vmem:[#allocation12_spill] sm:$0xff] %v3024_v0  ;;  %v3026_v1 = vpop.permute.xlu0 %754  ;;  %v3104_v0 = vld [vmem:[#allocation2 + $0x172] sm:$0xff] }
  0xc7   : > { %4482 = vst [vmem:[#allocation13_spill] sm:$0xff] %v3026_v1  ;;  %v3068_v1 = vld [vmem:[#allocation2 + $0x12a] sm:$0xff] }
  0xc8   : > { %4491 = vst [vmem:[#allocation22_spill] sm:$0xff] %v3068_v1 }
  0xc9   : > { %4503 = vst [vmem:[#allocation34_spill] sm:$0xff] %v3104_v0 }
  0xca   : > { %900 = vrot.lane.b32.xlu2 %v3028_v4, %s2510_s11 }
  0xcb   : > { %898 = vrot.lane.b32.xlu1 %v3030_v6, %s2510_s11 }
  0xcc   : > { %v3038_v13 = vpop.permute.xlu2 %770  ;;  %908 = vrot.lane.b32.xlu0 %v3032_v9, %s2510_s11  ;;  %v3228_v9 = vld [vmem:[#allocation2 + $0xc8] sm:$0xff] }
  0xcd   : > { %4484 = vst [vmem:[#allocation15_spill] sm:$0xff] %v3038_v13  ;;  %v3042_v14 = vpop.permute.xlu1 %748  ;;  %v3100_v13 = vld [vmem:[#allocation2 + $0x142] sm:$0xff] }
  0xce   : > { %4485 = vst [vmem:[#allocation16_spill] sm:$0xff] %v3042_v14  ;;  %v3044_v15 = vpop.permute.xlu0 %760  ;;  %v3118_v14 = vld [vmem:[#allocation2 + $0x16a] sm:$0xff] }
  0xcf   : > { %4486 = vst [vmem:[#allocation17_spill] sm:$0xff] %v3044_v15 }
  0xd0   : > { %4501 = vst [vmem:[#allocation32_spill] sm:$0xff] %v3100_v13 }
  0xd1   : > { %4507 = vst [vmem:[#allocation38_spill] sm:$0xff] %v3118_v14 }
  0xd2   : > { %906 = vrot.lane.b32.xlu2 %v3046_v16, %s2510_s11  ;;  %4540 = vst [vmem:[#allocation71_spill] sm:$0xff] %v3228_v9 }
  0xd3   : > { %904 = vrot.lane.b32.xlu1 %v3048_v18, %s2510_s11 }
  0xd4   : > { %v3056_v36 = vpop.permute.xlu2 %776  ;;  %914 = vrot.lane.b32.xlu0 %v3050_v22, %s2510_s11 }
  0xd5   : > { %4488 = vst [vmem:[#allocation19_spill] sm:$0xff] %v3056_v36  ;;  %v3060_v38 = vpop.permute.xlu1 %756 }
  0xd6   : > { %4489 = vst [vmem:[#allocation20_spill] sm:$0xff] %v3060_v38  ;;  %v3062_v15 = vpop.permute.xlu0 %766  ;;  %v3082_v38 = vld [vmem:[#allocation2 + $0x122] sm:$0xff] }
  0xd7   : > { %4490 = vst [vmem:[#allocation21_spill] sm:$0xff] %v3062_v15 }
  0xd8   : > { %4495 = vst [vmem:[#allocation26_spill] sm:$0xff] %v3082_v38 }
  0xda   : > { %912 = vrot.lane.b32.xlu2 %v3064_v58, %s2510_s11 }
  0xdb   : > { %910 = vrot.lane.b32.xlu1 %v3066_v63, %s2510_s11 }
  0xdc   : > { %v3074_v51 = vpop.permute.xlu2 %782  ;;  %920 = vrot.lane.b32.xlu0 %v3068_v1, %s2510_s11  ;;  %v3124_v1 = vld [vmem:[#allocation2 + $0x30] sm:$0xff] }
  0xdd   : > { %4492 = vst [vmem:[#allocation23_spill] sm:$0xff] %v3074_v51  ;;  %v3078_v50 = vpop.permute.xlu1 %762 }
  0xde   : > { %4493 = vst [vmem:[#allocation24_spill] sm:$0xff] %v3078_v50  ;;  %v3080_v15 = vpop.permute.xlu0 %772 }
  0xdf   : > { %4494 = vst [vmem:[#allocation25_spill] sm:$0xff] %v3080_v15  ;;  %v3102_v15 = vld [vmem:[#allocation2 + $0x13a] sm:$0xff] }
  0xe0   : > { %4502 = vst [vmem:[#allocation33_spill] sm:$0xff] %v3102_v15 }
  0xe1   : > { %4509 = vst [vmem:[#allocation40_spill] sm:$0xff] %v3124_v1 }
  0xe2   : > { %918 = vrot.lane.b32.xlu2 %v3082_v38, %s2510_s11 }
  0xe3   : > { %916 = vrot.lane.b32.xlu1 %v3084_v46, %s2510_s11 }
  0xe4   : > { %v3092_v51 = vpop.permute.xlu2 %788  ;;  %926 = vrot.lane.b32.xlu0 %v3086_v59, %s2510_s11  ;;  %v3120_v59 = vld [vmem:[#allocation2 + $0x15a] sm:$0xff] }
  0xe5   : > { %4498 = vst [vmem:[#allocation29_spill] sm:$0xff] %v3092_v51  ;;  %v3096_v50 = vpop.permute.xlu1 %768 }
  0xe6   : > { %4499 = vst [vmem:[#allocation30_spill] sm:$0xff] %v3096_v50  ;;  %v3098_v36 = vpop.permute.xlu0 %778 }
  0xe7   : > { %4500 = vst [vmem:[#allocation31_spill] sm:$0xff] %v3098_v36 }
  0xe8   : > { %4508 = vst [vmem:[#allocation39_spill] sm:$0xff] %v3120_v59 }
  0xea   : > { %924 = vrot.lane.b32.xlu2 %v3100_v13, %s2510_s11 }
  0xeb   : > { %922 = vrot.lane.b32.xlu1 %v3102_v15, %s2510_s11  ;;  %v3138_v15 = vld [vmem:[#allocation2 + $0x18] sm:$0xff] }
  0xec   : > { %v3110_v51 = vpop.permute.xlu2 %794  ;;  %932 = vrot.lane.b32.xlu0 %v3104_v0, %s2510_s11  ;;  %v3136_v0 = vld [vmem:[#allocation2 + $0x20] sm:$0xff]  ;;  %4514 = vst [vmem:[#allocation45_spill] sm:$0xff] %v3138_v15 }
  0xed   : > { %4504 = vst [vmem:[#allocation35_spill] sm:$0xff] %v3110_v51  ;;  %v3114_v50 = vpop.permute.xlu1 %774 }
  0xee   : > { %4505 = vst [vmem:[#allocation36_spill] sm:$0xff] %v3114_v50  ;;  %v3116_v36 = vpop.permute.xlu0 %784 }
  0xef   : > { %4506 = vst [vmem:[#allocation37_spill] sm:$0xff] %v3116_v36 }
  0xf0   : > { %4513 = vst [vmem:[#allocation44_spill] sm:$0xff] %v3136_v0 }
  0xf2   : > { %930 = vrot.lane.b32.xlu2 %v3118_v14, %s2510_s11  ;;  %v3142_v14 = vld [vmem:[#allocation2 + $0x50] sm:$0xff] }
  0xf3   : > { %928 = vrot.lane.b32.xlu1 %v3120_v59, %s2510_s11  ;;  %4515 = vst [vmem:[#allocation46_spill] sm:$0xff] %v3142_v14  ;;  %v3156_v59 = vld [vmem:[#allocation2 + $0x38] sm:$0xff] }
  0xf4   : > { %v3128_v51 = vpop.permute.xlu2 %800  ;;  %1002 = vrot.lane.b32.xlu0 %v3124_v1, %s2511_s12  ;;  %4520 = vst [vmem:[#allocation51_spill] sm:$0xff] %v3156_v59 }
  0xf5   : > { %4510 = vst [vmem:[#allocation41_spill] sm:$0xff] %v3128_v51  ;;  %v3132_v50 = vpop.permute.xlu1 %780 }
  0xf6   : > { %4511 = vst [vmem:[#allocation42_spill] sm:$0xff] %v3132_v50  ;;  %v3134_v36 = vpop.permute.xlu0 %790 }
  0xf7   : > { %4512 = vst [vmem:[#allocation43_spill] sm:$0xff] %v3134_v36  ;;  %v3154_v36 = vld [vmem:[#allocation2 + $0x48] sm:$0xff] }
  0xf8   : > { %4519 = vst [vmem:[#allocation50_spill] sm:$0xff] %v3154_v36 }
  0xfa   : > { %1000 = vrot.lane.b32.xlu2 %v3136_v0, %s2511_s12  ;;  %v3160_v0 = vld [vmem:[#allocation2 + $0x78] sm:$0xff] }
  0xfb   : > { %998 = vrot.lane.b32.xlu1 %v3138_v15, %s2511_s12  ;;  %4521 = vst [vmem:[#allocation52_spill] sm:$0xff] %v3160_v0 }
  0xfc   : > { %v3146_v51 = vpop.permute.xlu2 %870  ;;  %1008 = vrot.lane.b32.xlu0 %v3142_v14, %s2511_s12  ;;  %v3172_v14 = vld [vmem:[#allocation2 + $0x68] sm:$0xff] }
  0xfd   : > { %4516 = vst [vmem:[#allocation47_spill] sm:$0xff] %v3146_v51  ;;  %v3150_v1 = vpop.permute.xlu1 %786 }
  0xfe   : > { %4517 = vst [vmem:[#allocation48_spill] sm:$0xff] %v3150_v1  ;;  %v3152_v50 = vpop.permute.xlu0 %796 }
  0xff   : > { %4518 = vst [vmem:[#allocation49_spill] sm:$0xff] %v3152_v50  ;;  %v429_v50 = vld [vmem:[#allocation2 + $0x60] sm:$0xff] }
 0x100   : > { %4525 = vst [vmem:[#allocation56_spill] sm:$0xff] %v3172_v14 }
 0x102   : > { %1006 = vrot.lane.b32.xlu2 %v3154_v36, %s2511_s12  ;;  %v3176_v36 = vld [vmem:[#allocation2 + $0x98] sm:$0xff] }
 0x103   : > { %1004 = vrot.lane.b32.xlu1 %v3156_v59, %s2511_s12  ;;  %4526 = vst [vmem:[#allocation57_spill] sm:$0xff] %v3176_v36 }
 0x104   : > { %v3164_v51 = vpop.permute.xlu2 %876  ;;  %1014 = vrot.lane.b32.xlu0 %v3160_v0, %s2511_s12 }
 0x105   : > { %4522 = vst [vmem:[#allocation53_spill] sm:$0xff] %v3164_v51  ;;  %v3168_v1 = vpop.permute.xlu1 %792  ;;  %v432_v51 = vld [vmem:[#allocation2 + $0x80] sm:$0xff] }
 0x106   : > { %4523 = vst [vmem:[#allocation54_spill] sm:$0xff] %v3168_v1  ;;  %v3170_v15 = vpop.permute.xlu0 %802 }
 0x107   : > { %4524 = vst [vmem:[#allocation55_spill] sm:$0xff] %v3170_v15  ;;  %v3187_v15 = vld [vmem:[#allocation2 + $0x90] sm:$0xff] }
 0x108   : > { %4530 = vst [vmem:[#allocation61_spill] sm:$0xff] %v3187_v15 }
 0x10a   : > { %1012 = vrot.lane.b32.xlu2 %v3172_v14, %s2511_s12  ;;  %v3191_v14 = vld [vmem:[#allocation2 + $0xc0] sm:$0xff] }
 0x10b   : > { %1010 = vrot.lane.b32.xlu1 %v429_v50, %s2511_s12  ;;  %4531 = vst [vmem:[#allocation62_spill] sm:$0xff] %v3191_v14 }
 0x10c   : > { %v3179_v59 = vpop.permute.xlu2 %882  ;;  %1020 = vrot.lane.b32.xlu0 %v3176_v36, %s2511_s12  ;;  %v3204_v36 = vld [vmem:[#allocation2 + $0xa8] sm:$0xff] }
 0x10d   : > { %4527 = vst [vmem:[#allocation58_spill] sm:$0xff] %v3179_v59  ;;  %v3183_v0 = vpop.permute.xlu1 %798 }
 0x10e   : > { %4528 = vst [vmem:[#allocation59_spill] sm:$0xff] %v3183_v0  ;;  %v3185_v1 = vpop.permute.xlu0 %872 }
 0x10f   : > { %4529 = vst [vmem:[#allocation60_spill] sm:$0xff] %v3185_v1  ;;  %v3202_v1 = vld [vmem:[#allocation2 + $0xb0] sm:$0xff] }
 0x110   : > { %4535 = vst [vmem:[#allocation66_spill] sm:$0xff] %v3202_v1 }
 0x111   : > { %4536 = vst [vmem:[#allocation67_spill] sm:$0xff] %v3204_v36 }
 0x112   : > { %1018 = vrot.lane.b32.xlu2 %v3187_v15, %s2511_s12  ;;  %v3208_v15 = vld [vmem:[#allocation2 + $0xe0] sm:$0xff] }
 0x113   : > { %1016 = vrot.lane.b32.xlu1 %v432_v51, %s2511_s12  ;;  %4537 = vst [vmem:[#allocation68_spill] sm:$0xff] %v3208_v15 }
 0x114   : > { %v3194_v50 = vpop.permute.xlu2 %888  ;;  %1026 = vrot.lane.b32.xlu0 %v3191_v14, %s2511_s12  ;;  %v227_v14 = vld [vmem:[%s2671_s6 + $0xf8] sm:$0xff] }
 0x115   : > { %4532 = vst [vmem:[#allocation63_spill] sm:$0xff] %v3194_v50  ;;  %v3198_v59 = vpop.permute.xlu1 %804  ;;  %v226_v50 = vld [vmem:[%s2671_s6 + $0xf0] sm:$0xff]  ;;  %v264_v13 = vmul.f32 %v2680_v2, %v227_v14 }
 0x116   : > { %4533 = vst [vmem:[#allocation64_spill] sm:$0xff] %v3198_v59  ;;  %v3200_v0 = vpop.permute.xlu0 %878  ;;  %v263_v59 = vmul.f32 %v2680_v2, %v226_v50 }
 0x117   : > { %4534 = vst [vmem:[#allocation65_spill] sm:$0xff] %v3200_v0  ;;  %v299_v46 = vadd.f32 %v2697_v7, %v264_v13  ;;  %v3252_v13 = vld [vmem:[#allocation2 + $0x128] sm:$0xff] }
 0x119   : > { %v331_v38 = vmax.f32 %v299_v46, 0.0 }
 0x11a   : > { %1024 = vrot.lane.b32.xlu2 %v3202_v1, %s2511_s12  ;;  %v298_v1 = vadd.f32 %v2697_v7, %v263_v59  ;;  %v3246_v59 = vld [vmem:[#allocation2 + $0xf8] sm:$0xff] }
 0x11b   : > { %1022 = vrot.lane.b32.xlu1 %v3204_v36, %s2511_s12  ;;  %v3226_v36 = vld [vmem:[#allocation2 + $0xd8] sm:$0xff]  ;;  %420 = vst.msk [vmem:[#allocation2 + $0x189] sm:$0xff] %vm332_vm0, %v331_v38 }
 0x11c   : > { %v3212_v51 = vpop.permute.xlu2 %894  ;;  %1032 = vrot.lane.b32.xlu0 %v3208_v15, %s2511_s12  ;;  %v3232_v15 = vld [vmem:[#allocation2 + $0x108] sm:$0xff] }
 0x11d   : > { %4538 = vst [vmem:[#allocation69_spill] sm:$0xff] %v3212_v51  ;;  %v3218_v0 = vpop.permute.xlu1 %874  ;;  %v330_v51 = vmax.f32 %v298_v1, 0.0  ;;  %v3248_v1 = vld [vmem:[#allocation2 + $0xf0] sm:$0xff] }
 0x11e   : > { %v3222_v22 = vpop.permute.xlu0 %884  ;;  %4541 = vst [vmem:[#allocation72_spill] sm:$0xff] %v3232_v15 }
 0x11f   : > { %4539 = vst [vmem:[#allocation70_spill] sm:$0xff] %v3222_v22 }
 0x120   : > { %419 = vst.msk [vmem:[#allocation2 + $0x181] sm:$0xff] %vm332_vm0, %v330_v51  ;;  %v3264_v51 = vld [vmem:[#allocation2 + $0x120] sm:$0xff] }
 0x121   : > { %4545 = vst [vmem:[#allocation76_spill] sm:$0xff] %v3248_v1 }
 0x122   : > { %1030 = vrot.lane.b32.xlu2 %v3226_v36, %s2511_s12 }
 0x123   : > { %1028 = vrot.lane.b32.xlu1 %v3228_v9, %s2511_s12  ;;  %v3282_v9 = vld [vmem:[#allocation2 + $0x140] sm:$0xff] }
 0x124   : > { %v3237_v2 = vpop.permute.xlu2 %900  ;;  %1038 = vrot.lane.b32.xlu0 %v3232_v15, %s2511_s12  ;;  %v3288_v15 = vld [vmem:[#allocation2 + $0x170] sm:$0xff] }
 0x125   : > { %4542 = vst [vmem:[#allocation73_spill] sm:$0xff] %v3237_v2  ;;  %v3242_v7 = vpop.permute.xlu1 %880 }
 0x126   : > { %4543 = vst [vmem:[#allocation74_spill] sm:$0xff] %v3242_v7  ;;  %v3244_v46 = vpop.permute.xlu0 %890  ;;  %v3266_v7 = vld [vmem:[#allocation2 + $0x110] sm:$0xff] }
 0x127   : > { %4544 = vst [vmem:[#allocation75_spill] sm:$0xff] %v3244_v46  ;;  %v3270_v46 = vld [vmem:[#allocation2 + $0x150] sm:$0xff]  ;;  %v3316_v2 = vld [vmem:[#allocation2 + $0x180] sm:$0xff] }
 0x128   : > { %4549 = vst [vmem:[#allocation80_spill] sm:$0xff] %v3266_v7 }
 0x129   : > { %4550 = vst [vmem:[#allocation81_spill] sm:$0xff] %v3270_v46 }
 0x12a   : > { %1036 = vrot.lane.b32.xlu2 %v3246_v59, %s2511_s12  ;;  %4560 = vst [vmem:[#allocation91_spill] sm:$0xff] %v3316_v2 }
 0x12b   : > { %1034 = vrot.lane.b32.xlu1 %v3248_v1, %s2511_s12 }
 0x12c   : > { %v3256_v14 = vpop.permute.xlu2 %906  ;;  %1044 = vrot.lane.b32.xlu0 %v3252_v13, %s2511_s12 }
 0x12d   : > { %4546 = vst [vmem:[#allocation77_spill] sm:$0xff] %v3256_v14  ;;  %v3260_v38 = vpop.permute.xlu1 %886 }
 0x12e   : > { %4547 = vst [vmem:[#allocation78_spill] sm:$0xff] %v3260_v38  ;;  %v3262_v50 = vpop.permute.xlu0 %896 }
 0x12f   : > { %4548 = vst [vmem:[#allocation79_spill] sm:$0xff] %v3262_v50  ;;  %v3284_v50 = vld [vmem:[#allocation2 + $0x138] sm:$0xff] }
 0x130   : > { %4554 = vst [vmem:[#allocation85_spill] sm:$0xff] %v3284_v50 }
 0x132   : > { %1042 = vrot.lane.b32.xlu2 %v3264_v51, %s2511_s12 }
 0x133   : > { %1040 = vrot.lane.b32.xlu1 %v3266_v7, %s2511_s12 }
 0x134   : > { %v3274_v22 = vpop.permute.xlu2 %912  ;;  %1050 = vrot.lane.b32.xlu0 %v3270_v46, %s2511_s12  ;;  %v3302_v46 = vld [vmem:[#allocation2 + $0x158] sm:$0xff] }
 0x135   : > { %4551 = vst [vmem:[#allocation82_spill] sm:$0xff] %v3274_v22  ;;  %v3278_v38 = vpop.permute.xlu1 %892  ;;  %v3300_v22 = vld [vmem:[#allocation2 + $0x168] sm:$0xff] }
 0x136   : > { %4552 = vst [vmem:[#allocation83_spill] sm:$0xff] %v3278_v38  ;;  %v3280_v1 = vpop.permute.xlu0 %902 }
 0x137   : > { %4553 = vst [vmem:[#allocation84_spill] sm:$0xff] %v3280_v1 }
 0x138   : > { %4557 = vst [vmem:[#allocation88_spill] sm:$0xff] %v3300_v22 }
 0x139   : > { %4558 = vst [vmem:[#allocation89_spill] sm:$0xff] %v3302_v46 }
 0x13a   : > { %1048 = vrot.lane.b32.xlu2 %v3282_v9, %s2511_s12 }
 0x13b   : > { %1046 = vrot.lane.b32.xlu1 %v3284_v50, %s2511_s12 }
 0x13c   : > { %v3292_v7 = vpop.permute.xlu2 %918  ;;  %1056 = vrot.lane.b32.xlu0 %v3288_v15, %s2511_s12 }
 0x13d   : > { %v3296_v38 = vpop.permute.xlu1 %898 }
 0x13e   : > { %4555 = vst [vmem:[#allocation86_spill] sm:$0xff] %v3296_v38  ;;  %v3298_v1 = vpop.permute.xlu0 %908 }
 0x13f   : > { %4556 = vst [vmem:[#allocation87_spill] sm:$0xff] %v3298_v1  ;;  %v548_v1 = vld [vmem:[#allocation2 + $0x188] sm:$0xff] }
 0x142   : > { %1054 = vrot.lane.b32.xlu2 %v3300_v22, %s2511_s12 }
 0x143   : > { %1052 = vrot.lane.b32.xlu1 %v3302_v46, %s2511_s12 }
 0x144   : > { %v3308_v50 = vpop.permute.xlu2 %924  ;;  %1126 = vrot.lane.b32.xlu0 %v2782_v8, %s2512_s13 }
 0x145   : > { %v3312_v14 = vpop.permute.xlu1 %904 }
 0x146   : > { %v3314_v38 = vpop.permute.xlu0 %914 }
 0x147   : > { %4559 = vst [vmem:[#allocation90_spill] sm:$0xff] %v3314_v38 }
 0x14a   : > { %1060 = vrot.lane.b32.xlu2 %v548_v1, %s2511_s12 }
 0x14b   : > { %1058 = vrot.lane.b32.xlu1 %v3316_v2, %s2511_s12  ;;  %s188_s12 = sand.u32 1, %s2498_s16  }
 0x14c   : > { %v3321_v22 = vpop.permute.xlu2 %930  ;;  %1132 = vrot.lane.b32.xlu0 %v2801_v21, %s2512_s13  ;;  %s2249_s30 = scalar_lea.sflag [#allocation4], %s188_s12 }
 0x14d   : > { %v3325_v46 = vpop.permute.xlu1 %910 }
 0x14e   : > { %v3327_v8 = vpop.permute.xlu0 %920 }
 0x152   : > { %1130 = vrot.lane.b32.xlu2 %v2775_v3, %s2512_s13 }
 0x153   : > { %1128 = vrot.lane.b32.xlu1 %v2806_v25, %s2512_s13 }
 0x154   : > { %v3333_v38 = vpop.permute.xlu2 %1000  ;;  %1138 = vrot.lane.b32.xlu0 %v2829_v37, %s2512_s13 }
 0x155   : > { %v3337_v1 = vpop.permute.xlu1 %916 }
 0x156   : > { %v3339_v2 = vpop.permute.xlu0 %926 }
 0x15a   : > { %1136 = vrot.lane.b32.xlu2 %v2834_v40, %s2512_s13 }
 0x15b   : > { %1134 = vrot.lane.b32.xlu1 %v2788_v11, %s2512_s13 }
 0x15c   : > { %v3345_v21 = vpop.permute.xlu2 %1006  ;;  %1144 = vrot.lane.b32.xlu0 %v2853_v52, %s2512_s13 }
 0x15d   : > { %v3349_v3 = vpop.permute.xlu1 %922 }
 0x15e   : > { %v3351_v25 = vpop.permute.xlu0 %932 }
 0x162   : > { %1142 = vrot.lane.b32.xlu2 %v2858_v55, %s2512_s13 }
 0x163   : > { %1140 = vrot.lane.b32.xlu1 %v2810_v27, %s2512_s13 }
 0x164   : > { %v3357_v37 = vpop.permute.xlu2 %1012  ;;  %1150 = vrot.lane.b32.xlu0 %v2877_v5, %s2512_s13 }
 0x165   : > { %v3361_v11 = vpop.permute.xlu1 %928 }
 0x166   : > { %4561 = vst [vmem:[#allocation92_spill] sm:$0xff] %v3361_v11  ;;  %v3363_v40 = vpop.permute.xlu0 %1002  ;;  %v4601_v11 = vld [vmem:[#allocation16_spill] sm:$0xff] }
 0x16a   : > { %1148 = vrot.lane.b32.xlu2 %v2882_v10, %s2512_s13 }
 0x16b   : > { %1146 = vrot.lane.b32.xlu1 %v2837_v42, %s2512_s13 }
 0x16c   : > { %v3369_v52 = vpop.permute.xlu2 %1018  ;;  %1156 = vrot.lane.b32.xlu0 %v2896_v17, %s2512_s13 }
 0x16d   : > { %4562 = vst [vmem:[#allocation93_spill] sm:$0xff] %v3369_v52  ;;  %v3373_v27 = vpop.permute.xlu1 %998 }
 0x16e   : > { %4563 = vst [vmem:[#allocation94_spill] sm:$0xff] %v3373_v27  ;;  %v3375_v55 = vpop.permute.xlu0 %1008 }
 0x16f   : > { %4564 = vst [vmem:[#allocation95_spill] sm:$0xff] %v3375_v55  ;;  %v3575_v55 = vld [vmem:[#allocation2 + $0x182] sm:$0xff] }
 0x172   : > { %1154 = vrot.lane.b32.xlu2 %v2899_v19, %s2512_s13 }
 0x173   : > { %1152 = vrot.lane.b32.xlu1 %v2861_v57, %s2512_s13 }
 0x174   : > { %v3381_v5 = vpop.permute.xlu2 %1024  ;;  %1162 = vrot.lane.b32.xlu0 %v2910_v23, %s2512_s13 }
 0x175   : > { %v3385_v42 = vpop.permute.xlu1 %1004 }
 0x176   : > { %v3387_v10 = vpop.permute.xlu0 %1014 }
 0x177   : > { %4565 = vst [vmem:[#allocation96_spill] sm:$0xff] %v3387_v10  ;;  %v3451_v10 = vld [vmem:[#allocation2 + $0x189] sm:$0xff] }
 0x178   : > { %4571 = vst [vmem:[#allocation102_spill] sm:$0xff] %v3451_v10 }
 0x17a   : > { %1160 = vrot.lane.b32.xlu2 %v2912_v24, %s2512_s13 }
 0x17b   : > { %1158 = vrot.lane.b32.xlu1 %v2884_v12, %s2512_s13 }
 0x17c   : > { %v3393_v17 = vpop.permute.xlu2 %1030  ;;  %1168 = vrot.lane.b32.xlu0 %v2922_v28, %s2512_s13 }
 0x17d   : > { %v3397_v57 = vpop.permute.xlu1 %1010 }
 0x17e   : > { %4566 = vst [vmem:[#allocation97_spill] sm:$0xff] %v3397_v57  ;;  %v3399_v19 = vpop.permute.xlu0 %1020 }
 0x17f   : > { %4567 = vst [vmem:[#allocation98_spill] sm:$0xff] %v3399_v19 }
 0x182   : > { %1166 = vrot.lane.b32.xlu2 %v2924_v29, %s2512_s13 }
 0x183   : > { %1164 = vrot.lane.b32.xlu1 %v2901_v20, %s2512_s13 }
 0x184   : > { %v3405_v23 = vpop.permute.xlu2 %1036  ;;  %1174 = vrot.lane.b32.xlu0 %v2934_v31, %s2512_s13  ;;  %v3425_v31 = vld [vmem:[#allocation2 + $0x181] sm:$0xff] }
 0x185   : > { %v3409_v12 = vpop.permute.xlu1 %1016  ;;  %4570 = vst [vmem:[#allocation101_spill] sm:$0xff] %v3425_v31 }
 0x186   : > { %4568 = vst [vmem:[#allocation99_spill] sm:$0xff] %v3409_v12  ;;  %v3411_v24 = vpop.permute.xlu0 %1026 }
 0x18a   : > { %1172 = vrot.lane.b32.xlu2 %v2936_v32, %s2512_s13 }
 0x18b   : > { %1170 = vrot.lane.b32.xlu1 %v2914_v26, %s2512_s13 }
 0x18c   : > { %v3417_v28 = vpop.permute.xlu2 %1042  ;;  %1180 = vrot.lane.b32.xlu0 %v2946_v34, %s2512_s13 }
 0x18d   : > { %v3421_v20 = vpop.permute.xlu1 %1022 }
 0x18e   : > { %4569 = vst [vmem:[#allocation100_spill] sm:$0xff] %v3421_v20  ;;  %v3423_v29 = vpop.permute.xlu0 %1032 }
 0x192   : > { %1178 = vrot.lane.b32.xlu2 %v2948_v35, %s2512_s13 }
 0x193   : > { %1176 = vrot.lane.b32.xlu1 %v2926_v30, %s2512_s13 }
 0x194   : > { %v3431_v32 = vpop.permute.xlu2 %1048  ;;  %1186 = vrot.lane.b32.xlu0 %v3425_v31, %s2512_s13 }
 0x195   : > { %v3435_v26 = vpop.permute.xlu1 %1028 }
 0x196   : > { %v3437_v34 = vpop.permute.xlu0 %1038 }
 0x19a   : > { %1184 = vrot.lane.b32.xlu2 %v2955_v39, %s2512_s13 }
 0x19b   : > { %1182 = vrot.lane.b32.xlu1 %v2938_v33, %s2512_s13 }
 0x19c   : > { %v3443_v12 = vpop.permute.xlu2 %1054  ;;  %1256 = vrot.lane.b32.xlu0 %v2964_v43, %s2513_s14 }
 0x19d   : > { %v3447_v30 = vpop.permute.xlu1 %1034 }
 0x19e   : > { %v3449_v35 = vpop.permute.xlu0 %1044 }
 0x1a2   : > { %1254 = vrot.lane.b32.xlu2 %v2966_v44, %s2513_s14 }
 0x1a3   : > { %1188 = vrot.lane.b32.xlu1 %v3451_v10, %s2512_s13  ;;  %s2330_s13 = sshll.u32 %s188_s12, 8 }
 0x1a4   : > { %v3457_v39 = vpop.permute.xlu2 %1060  ;;  %1262 = vrot.lane.b32.xlu0 %v2978_v47, %s2513_s14 }
 0x1a5   : > { %v3461_v33 = vpop.permute.xlu1 %1040 }
 0x1a6   : > { %v3463_v43 = vpop.permute.xlu0 %1050 }
 0x1aa   : > { %1260 = vrot.lane.b32.xlu2 %v2980_v48, %s2513_s14 }
 0x1ab   : > { %1258 = vrot.lane.b32.xlu1 %v2957_v41, %s2513_s14 }
 0x1ac   : > { %v3469_v31 = vpop.permute.xlu2 %1130  ;;  %1268 = vrot.lane.b32.xlu0 %v2994_v53, %s2513_s14 }
 0x1ad   : > { %v3473_v44 = vpop.permute.xlu1 %1046 }
 0x1ae   : > { %v3475_v10 = vpop.permute.xlu0 %1056 }
 0x1af   : > { %4572 = vst [vmem:[#allocation103_spill] sm:$0xff] %v3475_v10 }
 0x1b2   : > { %1266 = vrot.lane.b32.xlu2 %v2996_v54, %s2513_s14 }
 0x1b3   : > { %1264 = vrot.lane.b32.xlu1 %v2968_v45, %s2513_s14 }
 0x1b4   : > { %v3481_v47 = vpop.permute.xlu2 %1136  ;;  %1274 = vrot.lane.b32.xlu0 %v3010_v60, %s2513_s14 }
 0x1b5   : > { %4573 = vst [vmem:[#allocation104_spill] sm:$0xff] %v3481_v47  ;;  %v3485_v41 = vpop.permute.xlu1 %1052  ;;  %v4591_v47 = vld [vmem:[#allocation39_spill] sm:$0xff] }
 0x1b6   : > { %v3487_v48 = vpop.permute.xlu0 %1126 }
 0x1b7   : > { %4574 = vst [vmem:[#allocation105_spill] sm:$0xff] %v3487_v48  ;;  %v4592_v48 = vld [vmem:[#allocation28_spill] sm:$0xff] }
 0x1ba   : > { %1272 = vrot.lane.b32.xlu2 %v3012_v61, %s2513_s14 }
 0x1bb   : > { %1270 = vrot.lane.b32.xlu1 %v2982_v49, %s2513_s14 }
 0x1bc   : > { %v3493_v53 = vpop.permute.xlu2 %1142  ;;  %1280 = vrot.lane.b32.xlu0 %v3028_v4, %s2513_s14 }
 0x1bd   : > { %4575 = vst [vmem:[#allocation106_spill] sm:$0xff] %v3493_v53  ;;  %v3497_v45 = vpop.permute.xlu1 %1058 }
 0x1be   : > { %v3499_v54 = vpop.permute.xlu0 %1132 }
 0x1c2   : > { %1278 = vrot.lane.b32.xlu2 %v3030_v6, %s2513_s14 }
 0x1c3   : > { %1276 = vrot.lane.b32.xlu1 %v2998_v56, %s2513_s14 }
 0x1c4   : > { %v3505_v60 = vpop.permute.xlu2 %1148  ;;  %1286 = vrot.lane.b32.xlu0 %v3046_v16, %s2513_s14  ;;  %v4579_v16 = vld [vmem:[#allocation14_spill] sm:$0xff] }
 0x1c5   : > { %4576 = vst [vmem:[#allocation107_spill] sm:$0xff] %v3505_v60  ;;  %v3509_v49 = vpop.permute.xlu1 %1128 }
 0x1c6   : > { %v3511_v61 = vpop.permute.xlu0 %1138 }
 0x1c7   : > { %4577 = vst [vmem:[#allocation108_spill] sm:$0xff] %v3511_v61 }
 0x1ca   : > { %1284 = vrot.lane.b32.xlu2 %v3048_v18, %s2513_s14  ;;  %v4580_v18 = vld [vmem:[#allocation26_spill] sm:$0xff] }
 0x1cb   : > { %1282 = vrot.lane.b32.xlu1 %v3014_v62, %s2513_s14 }
 0x1cc   : > { %v3517_v4 = vpop.permute.xlu2 %1154  ;;  %1292 = vrot.lane.b32.xlu0 %v3064_v58, %s2513_s14  ;;  %v4583_v58 = vld [vmem:[#allocation27_spill] sm:$0xff] }
 0x1cd   : > { %v3521_v56 = vpop.permute.xlu1 %1134 }
 0x1ce   : > { %v3523_v6 = vpop.permute.xlu0 %1144 }
 0x1cf   : > { %4578 = vst [vmem:[#allocation109_spill] sm:$0xff] %v3523_v6  ;;  %v4584_v6 = vld [vmem:[#allocation18_spill] sm:$0xff] }
 0x1d2   : > { %1290 = vrot.lane.b32.xlu2 %v3066_v63, %s2513_s14  ;;  %v4585_v63 = vld [vmem:[#allocation32_spill] sm:$0xff] }
 0x1d3   : > { %1288 = vrot.lane.b32.xlu1 %v4579_v16, %s2513_s14  ;;  %4593 = vst [vmem:[#allocation32_spill] sm:$0xff] %v3575_v55 }
 0x1d4   : > { %v3529_v53 = vpop.permute.xlu2 %1160  ;;  %1298 = vrot.lane.b32.xlu0 %v4580_v18, %s2513_s14  ;;  %v4587_v18 = vld [vmem:[#allocation33_spill] sm:$0xff] }
 0x1d5   : > { %v3533_v62 = vpop.permute.xlu1 %1140 }
 0x1d6   : > { %4581 = vst [vmem:[#allocation14_spill] sm:$0xff] %v3533_v62  ;;  %v3535_v20 = vpop.permute.xlu0 %1150  ;;  %v4600_v62 = vld [vmem:[#allocation56_spill] sm:$0xff] }
 0x1d7   : > { %4582 = vst [vmem:[#allocation26_spill] sm:$0xff] %v3535_v20  ;;  %v4588_v20 = vld [vmem:[#allocation22_spill] sm:$0xff] }
 0x1da   : > { %1296 = vrot.lane.b32.xlu2 %v4583_v58, %s2513_s14  ;;  %v4589_v58 = vld [vmem:[#allocation38_spill] sm:$0xff] }
 0x1db   : > { %1294 = vrot.lane.b32.xlu1 %v4584_v6, %s2513_s14 }
 0x1dc   : > { %v3541_v60 = vpop.permute.xlu2 %1166  ;;  %1304 = vrot.lane.b32.xlu0 %v4585_v63, %s2513_s14  ;;  %v3561_v63 = vld [vmem:[#allocation2 + $0x18a] sm:$0xff] }
 0x1dd   : > { %v3545_v16 = vpop.permute.xlu1 %1146  ;;  %4590 = vst [vmem:[#allocation18_spill] sm:$0xff] %v3561_v63 }
 0x1de   : > { %4586 = vst [vmem:[#allocation27_spill] sm:$0xff] %v3545_v16  ;;  %v3547_v61 = vpop.permute.xlu0 %1156  ;;  %v4594_v16 = vld [vmem:[#allocation34_spill] sm:$0xff] }
 0x1e2   : > { %1302 = vrot.lane.b32.xlu2 %v4587_v18, %s2513_s14 }
 0x1e3   : > { %1300 = vrot.lane.b32.xlu1 %v4588_v20, %s2513_s14 }
 0x1e4   : > { %v3553_v19 = vpop.permute.xlu2 %1172  ;;  %1310 = vrot.lane.b32.xlu0 %v4589_v58, %s2513_s14 }
 0x1e5   : > { %v3557_v6 = vpop.permute.xlu1 %1152 }
 0x1e6   : > { %v3559_v57 = vpop.permute.xlu0 %1162 }
 0x1ea   : > { %1308 = vrot.lane.b32.xlu2 %v4591_v47, %s2513_s14  ;;  %v4595_v47 = vld [vmem:[#allocation43_spill] sm:$0xff] }
 0x1eb   : > { %1306 = vrot.lane.b32.xlu1 %v4592_v48, %s2513_s14  ;;  %v1758_v48 = vsel %vm332_vm0, %v3264_v51, %v4595_v47  ;;  %v615_v47 = vld [vmem:[#allocation2 + $0x38] sm:$0xff] }
 0x1ec   : > { %v3567_v18 = vpop.permute.xlu2 %1178  ;;  %1316 = vrot.lane.b32.xlu0 %v3561_v63, %s2513_s14  ;;  %v4597_v63 = vld [vmem:[#allocation50_spill] sm:$0xff]  ;;  %v1791_v52 = vsel %vm1766_vm2, %v1758_v48, %v3292_v7 }
 0x1ed   : > { %v3571_v20 = vpop.permute.xlu1 %1158 }
 0x1ee   : > { %v3573_v58 = vpop.permute.xlu0 %1168 }
 0x1f2   : > { %1314 = vrot.lane.b32.xlu2 %v3575_v55, %s2513_s14 }
 0x1f3   : > { %1312 = vrot.lane.b32.xlu1 %v4594_v16, %s2513_s14  ;;  %v1824_v16 = vsel %vm1799_vm3, %v1791_v52, %v3473_v44  ;;  %s4267_s14 = scalar_lea.vmem [#allocation3], %s2330_s13 }
 0x1f4   : > { %v3584_v27 = vpop.permute.xlu2 %1184  ;;  %1386 = vrot.lane.b32.xlu0 %v4597_v63, %s2514_s20  ;;  %v4598_v63 = vld [vmem:[#allocation49_spill] sm:$0xff]  ;;  %s2261_s28 = sshll.u32 %s4267_s14, 4  ;;  %s2262_s28 = int_to_ptr.vmem [resolvable:$true] %s2261_s28 }
 0x1f5   : > { %4596 = vst [vmem:[#allocation33_spill] sm:$0xff] %v3584_v27  ;;  %v3590_v10 = vpop.permute.xlu1 %1164  ;;  %v614_v27 = vld [vmem:[#allocation2 + $0x30] sm:$0xff]  ;;  %v1761_v7 = vsel %vm332_vm0, %v3282_v9, %v4598_v63  ;;  %v4602_v9 = vld [vmem:[#allocation44_spill] sm:$0xff] }
 0x1f6   : > { %v1175_v55 = vpop.permute.xlu0 %1174  ;;  %v1794_v52 = vsel %vm1766_vm2, %v1761_v7, %v3308_v50  ;;  %v1737_v63 = vsel %vm332_vm0, %v4602_v9, %v4601_v11  ;;  %v4604_v50 = vld [vmem:[#allocation54_spill] sm:$0xff] }
 0x1f7   : > { %v3595_v51 = vsel %vm1832_vm4, %v1824_v16, %v1175_v55  ;;  %v1827_v44 = vsel %vm1799_vm3, %v1794_v52, %v3485_v41  ;;  %v1759_v7 = vsel %vm332_vm0, %v3252_v13, %v4604_v50  ;;  %v4605_v52 = vld [vmem:[#allocation46_spill] sm:$0xff] }
 0x1f8   : > { %v4610_v50 = vld [vmem:[#allocation66_spill] sm:$0xff] }
 0x1fa   : > { %1384 = vrot.lane.b32.xlu2 %v615_v47, %s2514_s20  ;;  %v618_v47 = vld [vmem:[#allocation2 + $0x60] sm:$0xff] }
 0x1fb   : > { %1382 = vrot.lane.b32.xlu1 %v614_v27, %s2514_s20 }
 0x1fc   : > { %v3602_v48 = vpop.permute.xlu2 %1254  ;;  %1392 = vrot.lane.b32.xlu0 %v4600_v62, %s2514_s20 }
 0x1fd   : > { %4599 = vst [vmem:[#allocation22_spill] sm:$0xff] %v3602_v48  ;;  %v3608_v55 = vpop.permute.xlu1 %1170  ;;  %v4603_v48 = vld [vmem:[#allocation53_spill] sm:$0xff] }
 0x1fe   : > { %v1181_v16 = vpop.permute.xlu0 %1180  ;;  %v1770_v62 = vsel %vm1766_vm2, %v1737_v63, %v4603_v48 }
 0x1ff   : > { %v3613_v27 = vsel %vm1832_vm4, %v1827_v44, %v1181_v16  ;;  %v1803_v41 = vsel %vm1799_vm3, %v1770_v62, %v3385_v42  ;;  %v1792_v44 = vsel %vm1766_vm2, %v1759_v7, %v3327_v8  ;;  %v4606_v16 = vld [vmem:[#allocation61_spill] sm:$0xff]  ;;  %v621_v8 = vld [vmem:[#allocation2 + $0x80] sm:$0xff] }
 0x200   : > { %v1836_v11 = vsel %vm1832_vm4, %v1803_v41, %v3499_v54  ;;  %v1825_v13 = vsel %vm1799_vm3, %v1792_v44, %v3431_v32  ;;  %v4608_v54 = vld [vmem:[#allocation52_spill] sm:$0xff]  ;;  %v624_v41 = vld [vmem:[#allocation2 + $0xa8] sm:$0xff] }
 0x201   : > { %v4611_v44 = vld [vmem:[#allocation64_spill] sm:$0xff] }
 0x202   : > { %1390 = vrot.lane.b32.xlu2 %v618_v47, %s2514_s20 }
 0x203   : > { %1388 = vrot.lane.b32.xlu1 %v4605_v52, %s2514_s20 }
 0x204   : > { %v1261_v48 = vpop.permute.xlu2 %1260  ;;  %1398 = vrot.lane.b32.xlu0 %v4606_v16, %s2514_s20 }
 0x205   : > { %v3637_v47 = vsel %vm1865_vm5, %v1836_v11, %v1261_v48  ;;  %v1177_v42 = vpop.permute.xlu1 %1176  ;;  %v1765_v11 = vsel %vm332_vm0, %v3288_v15, %v4611_v44  ;;  %v4612_v48 = vld [vmem:[#allocation57_spill] sm:$0xff]  ;;  %v4614_v44 = vld [vmem:[#allocation12_spill] sm:$0xff] }
 0x206   : > { %4607 = vst [vmem:[#allocation38_spill] sm:$0xff] %v3637_v47  ;;  %v3640_v9 = vsel %vm1832_vm4, %v1825_v13, %v1177_v42  ;;  %v3642_v63 = vpop.permute.xlu0 %1186  ;;  %v1798_v16 = vsel %vm1766_vm2, %v1765_v11, %v3351_v25  ;;  %v627_v15 = vld [vmem:[#allocation2 + $0xc8] sm:$0xff]  ;;  %v4616_v11 = vld [vmem:[#allocation62_spill] sm:$0xff] }
 0x207   : > { %v1831_v42 = vsel %vm1799_vm3, %v1798_v16, %v3457_v39  ;;  %v4615_v47 = vld [vmem:[#allocation45_spill] sm:$0xff] }
 0x20a   : > { %1396 = vrot.lane.b32.xlu2 %v621_v8, %s2514_s20 }
 0x20b   : > { %1394 = vrot.lane.b32.xlu1 %v4608_v54, %s2514_s20  ;;  %v1736_v54 = vsel %vm332_vm0, %v4615_v47, %v4614_v44 }
 0x20c   : > { %v3647_v62 = vpop.permute.xlu2 %1266  ;;  %1404 = vrot.lane.b32.xlu0 %v4610_v50, %s2514_s20  ;;  %v1769_v25 = vsel %vm1766_vm2, %v1736_v54, %v3218_v0  ;;  %v630_v0 = vld [vmem:[#allocation2 + $0xf0] sm:$0xff]  ;;  %v4618_v54 = vld [vmem:[#allocation25_spill] sm:$0xff] }
 0x20d   : > { %4609 = vst [vmem:[#allocation39_spill] sm:$0xff] %v3647_v62  ;;  %v3651_v32 = vpop.permute.xlu1 %1182  ;;  %v1802_v39 = vsel %vm1799_vm3, %v1769_v25, %v3363_v40  ;;  %v1749_v44 = vsel %vm332_vm0, %v4610_v50, %v4618_v54  ;;  %v662_v40 = vld [vmem:[#allocation2 + $0xf1] sm:$0xff]  ;;  %v4619_v25 = vld [vmem:[#allocation73_spill] sm:$0xff] }
 0x20e   : > { %v3653_v7 = vpop.permute.xlu0 %1256 }
 0x212   : > { %1402 = vrot.lane.b32.xlu2 %v624_v41, %s2514_s20 }
 0x213   : > { %1400 = vrot.lane.b32.xlu1 %v4612_v48, %s2514_s20 }
 0x214   : > { %v3663_v13 = vpop.permute.xlu2 %1272  ;;  %1410 = vrot.lane.b32.xlu0 %v3226_v36, %s2514_s20 }
 0x215   : > { %4613 = vst [vmem:[#allocation28_spill] sm:$0xff] %v3663_v13  ;;  %v1189_v8 = vpop.permute.xlu1 %1188  ;;  %v1782_v13 = vsel %vm1766_vm2, %v1749_v44, %v4619_v25  ;;  %v4624_v25 = vld [vmem:[#allocation77_spill] sm:$0xff] }
 0x216   : > { %v3670_v41 = vsel %vm1832_vm4, %v1831_v42, %v1189_v8  ;;  %v3672_v62 = vpop.permute.xlu0 %1262  ;;  %v1835_v42 = vsel %vm1832_vm4, %v1802_v39, %v3469_v31  ;;  %v1815_v31 = vsel %vm1799_vm3, %v1782_v13, %v3435_v26  ;;  %v4620_v39 = vld [vmem:[#allocation68_spill] sm:$0xff]  ;;  %v702_v13 = vld [vmem:[#allocation2 + $0x152] sm:$0xff] }
 0x21a   : > { %1408 = vrot.lane.b32.xlu2 %v627_v15, %s2514_s20 }
 0x21b   : > { %1406 = vrot.lane.b32.xlu1 %v4616_v11, %s2514_s20 }
 0x21c   : > { %v3684_v16 = vpop.permute.xlu2 %1278  ;;  %1416 = vrot.lane.b32.xlu0 %v3246_v59, %s2514_s20 }
 0x21d   : > { %4617 = vst [vmem:[#allocation34_spill] sm:$0xff] %v3684_v16  ;;  %v1259_v47 = vpop.permute.xlu1 %1258 }
 0x21e   : > { %v3691_v8 = vsel %vm1865_vm5, %v1835_v42, %v1259_v47  ;;  %v3693_v15 = vpop.permute.xlu0 %1268  ;;  %v1848_v42 = vsel %vm1832_vm4, %v1815_v31, %v3547_v61  ;;  %v4625_v61 = vld [vmem:[#allocation81_spill] sm:$0xff]  ;;  %v4626_v31 = vld [vmem:[#allocation30_spill] sm:$0xff] }
 0x222   : > { %1414 = vrot.lane.b32.xlu2 %v630_v0, %s2514_s20  ;;  %v4623_v0 = vld [vmem:[#allocation31_spill] sm:$0xff] }
 0x223   : > { %1412 = vrot.lane.b32.xlu1 %v4620_v39, %s2514_s20  ;;  %v1752_v26 = vsel %vm332_vm0, %v3226_v36, %v4623_v0 }
 0x224   : > { %v1285_v47 = vpop.permute.xlu2 %1284  ;;  %1542 = vrot.lane.b32.xlu0 %v662_v40, %s2515_s22  ;;  %v1785_v16 = vsel %vm1766_vm2, %v1752_v26, %v4624_v25  ;;  %v1747_v40 = vsel %vm332_vm0, %v4612_v48, %v4626_v31 }
 0x225   : > { %v3709_v50 = vsel %vm1865_vm5, %v1848_v42, %v1285_v47  ;;  %v3711_v54 = vpop.permute.xlu1 %1264  ;;  %v1818_v42 = vsel %vm1799_vm3, %v1785_v16, %v3447_v30  ;;  %v4627_v47 = vld [vmem:[#allocation72_spill] sm:$0xff] }
 0x226   : > { %4621 = vst [vmem:[#allocation43_spill] sm:$0xff] %v3709_v50  ;;  %v3713_v44 = vpop.permute.xlu0 %1274  ;;  %v4628_v50 = vld [vmem:[#allocation79_spill] sm:$0xff]  ;;  %v1851_v0 = vsel %vm1832_vm4, %v1818_v42, %v3559_v57  ;;  %v4629_v42 = vld [vmem:[#allocation37_spill] sm:$0xff] }
 0x227   : > { %4622 = vst [vmem:[#allocation50_spill] sm:$0xff] %v3711_v54  ;;  %v1780_v36 = vsel %vm1766_vm2, %v1747_v40, %v4628_v50  ;;  %v694_v57 = vld [vmem:[#allocation2 + $0xf2] sm:$0xff] }
 0x228   : > { %v1813_v25 = vsel %vm1799_vm3, %v1780_v36, %v3381_v5  ;;  %v670_v40 = vld [vmem:[#allocation2 + $0x151] sm:$0xff] }
 0x229   : > { %v1846_v16 = vsel %vm1832_vm4, %v1813_v25, %v3557_v6  ;;  %v639_v54 = vld [vmem:[#allocation2 + $0x158] sm:$0xff]  ;;  %v4630_v5 = vld [vmem:[#allocation82_spill] sm:$0xff]  ;;  %v4632_v25 = vld [vmem:[#allocation84_spill] sm:$0xff] }
 0x22a   : > { %1430 = vrot.lane.b32.xlu2 %v4625_v61, %s2514_s20 }
 0x22b   : > { %1418 = vrot.lane.b32.xlu1 %v4627_v47, %s2514_s20 }
 0x22c   : > { %v1291_v26 = vpop.permute.xlu2 %1290  ;;  %1686 = vrot.lane.b32.xlu0 %v702_v13, %s2516_s23  ;;  %v1755_v13 = vsel %vm332_vm0, %v3246_v59, %v4629_v42 }
 0x22d   : > { %v3737_v48 = vsel %vm1865_vm5, %v1851_v0, %v1291_v26  ;;  %v3739_v30 = vpop.permute.xlu1 %1270  ;;  %v1788_v36 = vsel %vm1766_vm2, %v1755_v13, %v4630_v5  ;;  %v4631_v0 = vld [vmem:[#allocation36_spill] sm:$0xff]  ;;  %v654_v5 = vld [vmem:[#allocation2 + $0x91] sm:$0xff] }
 0x22e   : > { %v1281_v31 = vpop.permute.xlu0 %1280  ;;  %v1750_v6 = vsel %vm332_vm0, %v4616_v11, %v4631_v0  ;;  %v1821_v26 = vsel %vm1799_vm3, %v1788_v36, %v3461_v33  ;;  %v663_v36 = vld [vmem:[#allocation2 + $0xf9] sm:$0xff] }
 0x22f   : > { %v3744_v50 = vsel %vm1865_vm5, %v1846_v16, %v1281_v31  ;;  %v1783_v16 = vsel %vm1766_vm2, %v1750_v6, %v4632_v25  ;;  %v1854_v59 = vsel %vm1832_vm4, %v1821_v26, %v3573_v58  ;;  %v646_v58 = vld [vmem:[#allocation2 + $0x31] sm:$0xff] }
 0x230   : > { %v4633_v0 = vld [vmem:[#allocation15_spill] sm:$0xff]  ;;  %v4636_v25 = vld [vmem:[#allocation86_spill] sm:$0xff] }
 0x232   : > { %1670 = vrot.lane.b32.xlu2 %v694_v57, %s2516_s23  ;;  %v1816_v57 = vsel %vm1799_vm3, %v1783_v16, %v3393_v17  ;;  %v4635_v17 = vld [vmem:[#allocation42_spill] sm:$0xff]  ;;  %v4637_v16 = vld [vmem:[#allocation87_spill] sm:$0xff] }
 0x233   : > { %1558 = vrot.lane.b32.xlu1 %v670_v40, %s2515_s22  ;;  %v1849_v33 = vsel %vm1832_vm4, %v1816_v57, %v3571_v20  ;;  %v1753_v26 = vsel %vm332_vm0, %v4620_v39, %v4635_v17  ;;  %v4638_v17 = vld [vmem:[#allocation19_spill] sm:$0xff] }
 0x234   : > { %v1297_v31 = vpop.permute.xlu2 %1296  ;;  %1432 = vrot.lane.b32.xlu0 %v639_v54, %s2514_s20  ;;  %v4634_v54 = vld [vmem:[#allocation67_spill] sm:$0xff] }
 0x235   : > { %v3766_v42 = vsel %vm1865_vm5, %v1854_v59, %v1297_v31  ;;  %v3768_v11 = vpop.permute.xlu1 %1276  ;;  %v1748_v6 = vsel %vm332_vm0, %v4634_v54, %v4633_v0  ;;  %v1786_v59 = vsel %vm1766_vm2, %v1753_v26, %v4637_v16  ;;  %v686_v54 = vld [vmem:[#allocation2 + $0x92] sm:$0xff] }
 0x236   : > { %v1287_v40 = vpop.permute.xlu0 %1286  ;;  %v1781_v20 = vsel %vm1766_vm2, %v1748_v6, %v4636_v25  ;;  %v703_v6 = vld [vmem:[#allocation2 + $0x15a] sm:$0xff] }
 0x237   : > { %v3773_v13 = vsel %vm1865_vm5, %v1849_v33, %v1287_v40  ;;  %v1814_v31 = vsel %vm1799_vm3, %v1781_v20, %v3411_v24  ;;  %v1819_v33 = vsel %vm1799_vm3, %v1786_v59, %v3405_v23  ;;  %v678_v23 = vld [vmem:[#allocation2 + $0x32] sm:$0xff] }
 0x238   : > { %v1847_v39 = vsel %vm1832_vm4, %v1814_v31, %v3517_v4  ;;  %v4639_v4 = vld [vmem:[#allocation71_spill] sm:$0xff]  ;;  %v4641_v20 = vld [vmem:[#allocation90_spill] sm:$0xff] }
 0x239   : > { %v1751_v26 = vsel %vm332_vm0, %v4639_v4, %v4638_v17 }
 0x23a   : > { %1526 = vrot.lane.b32.xlu2 %v654_v5, %s2515_s22  ;;  %v1784_v25 = vsel %vm1766_vm2, %v1751_v26, %v3312_v14 }
 0x23b   : > { %1510 = vrot.lane.b32.xlu1 %v646_v58, %s2515_s22  ;;  %v1852_v58 = vsel %vm1832_vm4, %v1819_v33, %v3590_v10  ;;  %v1817_v59 = vsel %vm1799_vm3, %v1784_v25, %v3423_v29 }
 0x23c   : > { %v1303_v57 = vpop.permute.xlu2 %1302  ;;  %1544 = vrot.lane.b32.xlu0 %v663_v36, %s2515_s22 }
 0x23d   : > { %v3796_v40 = vsel %vm1865_vm5, %v3595_v51, %v1303_v57  ;;  %v1283_v5 = vpop.permute.xlu1 %1282  ;;  %v4640_v51 = vld [vmem:[#allocation48_spill] sm:$0xff] }
 0x23e   : > { %v3801_v0 = vsel %vm1865_vm5, %v1847_v39, %v1283_v5  ;;  %v1293_v24 = vpop.permute.xlu0 %1292  ;;  %v1756_v10 = vsel %vm332_vm0, %v4627_v47, %v4640_v51  ;;  %v1850_v47 = vsel %vm1832_vm4, %v1817_v59, %v3529_v53 }
 0x23f   : > { %v3804_v36 = vsel %vm1865_vm5, %v1852_v58, %v1293_v24  ;;  %v1789_v16 = vsel %vm1766_vm2, %v1756_v10, %v4641_v20  ;;  %v695_v24 = vld [vmem:[#allocation2 + $0xfa] sm:$0xff] }
 0x240   : > { %v1822_v57 = vsel %vm1799_vm3, %v1789_v16, %v3417_v28  ;;  %v671_v28 = vld [vmem:[#allocation2 + $0x159] sm:$0xff] }
 0x241   : > { %v1855_v39 = vsel %vm1832_vm4, %v1822_v57, %v3608_v55 }
 0x242   : > { %1654 = vrot.lane.b32.xlu2 %v686_v54, %s2516_s23  ;;  %v4642_v54 = vld [vmem:[#allocation55_spill] sm:$0xff] }
 0x243   : > { %1638 = vrot.lane.b32.xlu1 %v678_v23, %s2516_s23  ;;  %v4643_v23 = vld [vmem:[#allocation88_spill] sm:$0xff] }
 0x244   : > { %v1309_v31 = vpop.permute.xlu2 %1308  ;;  %1688 = vrot.lane.b32.xlu0 %v703_v6, %s2516_s23  ;;  %v1764_v53 = vsel %vm332_vm0, %v4643_v23, %v4642_v54  ;;  %v4644_v6 = vld [vmem:[#allocation23_spill] sm:$0xff] }
 0x245   : > { %v3827_v14 = vsel %vm1865_vm5, %v3613_v27, %v1309_v31  ;;  %v1289_v33 = vpop.permute.xlu1 %1288  ;;  %v4645_v27 = vld [vmem:[#allocation76_spill] sm:$0xff]  ;;  %v1797_v55 = vsel %vm1766_vm2, %v1764_v53, %v3321_v22  ;;  %v422_v22 = vld [vmem:[#allocation2 + $0x8] sm:$0xff]  ;;  %v4646_v31 = vld [vmem:[#allocation10_spill] sm:$0xff] }
 0x246   : > { %v3832_v5 = vsel %vm1865_vm5, %v1850_v47, %v1289_v33  ;;  %v1299_v29 = vpop.permute.xlu0 %1298  ;;  %v1754_v17 = vsel %vm332_vm0, %v4645_v27, %v4644_v6  ;;  %v1830_v26 = vsel %vm1799_vm3, %v1797_v55, %v3497_v45  ;;  %v1735_v57 = vsel %vm332_vm0, %v422_v22, %v4646_v31  ;;  %v647_v47 = vld [vmem:[#allocation2 + $0x39] sm:$0xff]  ;;  %v4653_v22 = vld [vmem:[#allocation65_spill] sm:$0xff] }
 0x247   : > { %v3835_v58 = vsel %vm1865_vm5, %v1855_v39, %v1299_v29  ;;  %v1787_v4 = vsel %vm1766_vm2, %v1754_v17, %v3325_v46  ;;  %v1863_v10 = vsel %vm1832_vm4, %v1830_v26, %v3642_v63  ;;  %v655_v63 = vld [vmem:[#allocation2 + $0x99] sm:$0xff]  ;;  %v664_v39 = vld [vmem:[#allocation2 + $0x109] sm:$0xff] }
 0x248   : > { %v1820_v51 = vsel %vm1799_vm3, %v1787_v4, %v3437_v34  ;;  %v4647_v33 = vld [vmem:[#allocation60_spill] sm:$0xff]  ;;  %v4648_v29 = vld [vmem:[#allocation29_spill] sm:$0xff] }
 0x249   : > { %v1853_v20 = vsel %vm1832_vm4, %v1820_v51, %v3541_v60  ;;  %v1768_v60 = vsel %vm1766_vm2, %v1735_v57, %v4647_v33  ;;  %v687_v51 = vld [vmem:[#allocation2 + $0x9a] sm:$0xff] }
 0x24a   : > { %1672 = vrot.lane.b32.xlu2 %v695_v24, %s2516_s23  ;;  %v4649_v24 = vld [vmem:[#allocation80_spill] sm:$0xff]  ;;  %v1801_v54 = vsel %vm1799_vm3, %v1768_v60, %v3333_v38 }
 0x24b   : > { %1560 = vrot.lane.b32.xlu1 %v671_v28, %s2515_s22  ;;  %v1757_v28 = vsel %vm332_vm0, %v4649_v24, %v4648_v29  ;;  %v1834_v6 = vsel %vm1832_vm4, %v1801_v54, %v3509_v49 }
 0x24c   : > { %v1315_v25 = vpop.permute.xlu2 %1314  ;;  %1434 = vrot.lane.b32.xlu0 %v4643_v23, %s2514_s20  ;;  %v1790_v53 = vsel %vm1766_vm2, %v1757_v28, %v3337_v1  ;;  %v1867_v17 = vsel %vm1865_vm5, %v1834_v6, %v3653_v7  ;;  %v696_v28 = vld [vmem:[#allocation2 + $0x10a] sm:$0xff] }
 0x24d   : > { %v3860_v46 = vsel %vm1865_vm5, %v1863_v10, %v1315_v25  ;;  %v1295_v45 = vpop.permute.xlu1 %1294  ;;  %v1823_v38 = vsel %vm1799_vm3, %v1790_v53, %v3449_v35  ;;  %v4651_v10 = vld [vmem:[#allocation6_spill] sm:$0xff]  ;;  %v4658_v6 = vld [vmem:[#allocation41_spill] sm:$0xff] }
 0x24e   : > { %v3863_v16 = vsel %vm1865_vm5, %v1853_v20, %v1295_v45  ;;  %v1305_v59 = vpop.permute.xlu0 %1304  ;;  %v1856_v49 = vsel %vm1832_vm4, %v1823_v38, %v3553_v19  ;;  %v679_v19 = vld [vmem:[#allocation2 + $0x3a] sm:$0xff]  ;;  %v704_v45 = vld [vmem:[#allocation2 + $0x16a] sm:$0xff] }
 0x24f   : > { %v3867_v34 = vsel %vm1865_vm5, %v3640_v9, %v1305_v59  ;;  %v4650_v9 = vld [vmem:[#allocation59_spill] sm:$0xff]  ;;  %v633_v53 = vld [vmem:[#allocation2 + $0x110] sm:$0xff] }
 0x250   : > { %v1762_v23 = vsel %vm332_vm0, %v4625_v61, %v4650_v9  ;;  %v4654_v59 = vld [vmem:[#allocation35_spill] sm:$0xff]  ;;  %v672_v9 = vld [vmem:[#allocation2 + $0x169] sm:$0xff] }
 0x251   : > { %v1795_v27 = vsel %vm1766_vm2, %v1762_v23, %v3339_v2  ;;  %v4657_v23 = vld [vmem:[#allocation70_spill] sm:$0xff] }
 0x252   : > { %1528 = vrot.lane.b32.xlu2 %v655_v63, %s2515_s22  ;;  %v1828_v1 = vsel %vm1799_vm3, %v1795_v27, %v3443_v12  ;;  %v4652_v12 = vld [vmem:[#allocation40_spill] sm:$0xff]  ;;  %v4655_v63 = vld [vmem:[#allocation85_spill] sm:$0xff] }
 0x253   : > { %1512 = vrot.lane.b32.xlu1 %v647_v47, %s2515_s22  ;;  %v1861_v2 = vsel %vm1832_vm4, %v1828_v1, %v3651_v32  ;;  %v1738_v25 = vsel %vm332_vm0, %v4652_v12, %v4651_v10  ;;  %v1760_v32 = vsel %vm332_vm0, %v4655_v63, %v4654_v59  ;;  %v4659_v27 = vld [vmem:[#allocation89_spill] sm:$0xff]  ;;  %v4661_v1 = vld [vmem:[#allocation14_spill] sm:$0xff]  ;;  %v4665_v59 = vld [vmem:[#allocation52_spill] sm:$0xff] }
 0x254   : > { %v1385_v55 = vpop.permute.xlu2 %1384  ;;  %1546 = vrot.lane.b32.xlu0 %v664_v39, %s2515_s22  ;;  %v1771_v20 = vsel %vm1766_vm2, %v1738_v25, %v4653_v22  ;;  %v1793_v57 = vsel %vm1766_vm2, %v1760_v32, %v3349_v3  ;;  %v1763_v38 = vsel %vm332_vm0, %v4659_v27, %v4658_v6  ;;  %v421_v25 = vld [vmem:[#allocation2] sm:$0xff]  ;;  %v648_v32 = vld [vmem:[#allocation2 + $0x49] sm:$0xff]  ;;  %v4675_v27 = vld [vmem:[#allocation95_spill] sm:$0xff] }
 0x255   : > { %v3899_v61 = vsel %vm1898_vm6, %v1867_v17, %v1385_v55  ;;  %v1301_v4 = vpop.permute.xlu1 %1300  ;;  %v1804_v31 = vsel %vm1799_vm3, %v1771_v20, %v3345_v21  ;;  %v1826_v33 = vsel %vm1799_vm3, %v1793_v57, %v3463_v43 }
 0x256   : > { %v3904_v35 = vsel %vm1865_vm5, %v1856_v49, %v1301_v4  ;;  %v1311_v7 = vpop.permute.xlu0 %1310  ;;  %v1837_v47 = vsel %vm1832_vm4, %v1804_v31, %v3521_v56  ;;  %v1859_v21 = vsel %vm1832_vm4, %v1826_v33, %v3567_v18  ;;  %v4662_v49 = vld [vmem:[#allocation103_spill] sm:$0xff] }
 0x257   : > { %v3907_v26 = vsel %vm1865_vm5, %v1861_v2, %v1311_v7  ;;  %v1870_v60 = vsel %vm1865_vm5, %v1837_v47, %v3672_v62  ;;  %v4656_v62 = vld [vmem:[#allocation20_spill] sm:$0xff]  ;;  %v4666_v31 = vld [vmem:[#allocation7_spill] sm:$0xff] }
 0x258   : > { %v1741_v54 = vsel %vm332_vm0, %v4605_v52, %v4656_v62  ;;  %v1734_v57 = vsel %vm332_vm0, %v421_v25, %v4666_v31  ;;  %v4667_v47 = vld [vmem:[#allocation75_spill] sm:$0xff] }
 0x259   : > { %v1774_v18 = vsel %vm1766_vm2, %v1741_v54, %v4657_v23  ;;  %v4672_v54 = vld [vmem:[#allocation74_spill] sm:$0xff] }
 0x25a   : > { %1656 = vrot.lane.b32.xlu2 %v687_v51, %s2516_s23  ;;  %v1807_v17 = vsel %vm1799_vm3, %v1774_v18, %v3357_v37  ;;  %v4663_v37 = vld [vmem:[#allocation33_spill] sm:$0xff]  ;;  %v4673_v23 = vld [vmem:[#allocation94_spill] sm:$0xff] }
 0x25b   : > { %1640 = vrot.lane.b32.xlu1 %v679_v19, %s2516_s23  ;;  %v1840_v52 = vsel %vm1832_vm4, %v1807_v17, %v4661_v1  ;;  %v4676_v17 = vld [vmem:[#allocation105_spill] sm:$0xff] }
 0x25c   : > { %v1391_v39 = vpop.permute.xlu2 %1390  ;;  %1690 = vrot.lane.b32.xlu0 %v704_v45, %s2516_s23  ;;  %v1873_v2 = vsel %vm1865_vm5, %v1840_v52, %v3693_v15  ;;  %v656_v15 = vld [vmem:[#allocation2 + $0xa9] sm:$0xff]  ;;  %v4664_v45 = vld [vmem:[#allocation24_spill] sm:$0xff] }
 0x25d   : > { %v3933_v29 = vsel %vm1898_vm6, %v1870_v60, %v1391_v39  ;;  %v1307_v3 = vpop.permute.xlu1 %1306  ;;  %v1744_v63 = vsel %vm332_vm0, %v4665_v59, %v4664_v45  ;;  %v688_v60 = vld [vmem:[#allocation2 + $0xaa] sm:$0xff]  ;;  %v4668_v39 = vld [vmem:[#allocation8_spill] sm:$0xff] }
 0x25e   : > { %v3936_v56 = vsel %vm1865_vm5, %v1859_v21, %v1307_v3  ;;  %v1317_v24 = vpop.permute.xlu0 %1316  ;;  %v1777_v33 = vsel %vm1766_vm2, %v1744_v63, %v4667_v47  ;;  %v4669_v21 = vld [vmem:[#allocation51_spill] sm:$0xff]  ;;  %v4677_v52 = vld [vmem:[#allocation104_spill] sm:$0xff]  ;;  %v641_v59 = vld [vmem:[#allocation2 + $0x170] sm:$0xff] }
 0x25f   : > { %v3940_v43 = vsel %vm1865_vm5, %v3670_v41, %v1317_v24  ;;  %v4660_v41 = vld [vmem:[#allocation92_spill] sm:$0xff]  ;;  %v1739_v3 = vsel %vm332_vm0, %v4669_v21, %v4668_v39  ;;  %v4670_v24 = vld [vmem:[#allocation47_spill] sm:$0xff]  ;;  %v1999_v21 = vld [vmem:[%s4422_s1 + $0x10] sm:$0xff] }
 0x260   : > { %v1796_v55 = vsel %vm1766_vm2, %v1763_v38, %v4660_v41  ;;  %v2001_v45 = vld [vmem:[%s4422_s1 + $0x20] sm:$0xf]  ;;  %v697_v63 = vld [vmem:[#allocation2 + $0x112] sm:$0xff] }
 0x261   : > { %v1829_v4 = vsel %vm1799_vm3, %v1796_v55, %v4662_v49  ;;  %2374 = vmatpush.msk.msra.mxu2 %vm2099_vm7, %v2001_v45  ;;  %2373 = vmatpush.msk.msra.mxu1 %vm2099_vm7, %v2001_v45 }
 0x262   : > { %1674 = vrot.lane.b32.xlu2 %v696_v28, %s2516_s23  ;;  %v1862_v51 = vsel %vm1832_vm4, %v1829_v4, %v4663_v37  ;;  %v4671_v28 = vld [vmem:[#allocation93_spill] sm:$0xff]  ;;  %v4678_v4 = vld [vmem:[#allocation22_spill] sm:$0xff]  ;;  %2375 = vmatpush.msk.msra.mxu3 %vm2099_vm7, %v2001_v45 }
 0x263   : > { %1562 = vrot.lane.b32.xlu1 %v672_v9, %s2515_s22  ;;  %v1810_v62 = vsel %vm1799_vm3, %v1777_v33, %v4671_v28  ;;  %v1772_v9 = vsel %vm1766_vm2, %v1739_v3, %v4672_v54  ;;  %2333 = vmatpush.msk.msra.mxu0 %vm2099_vm7, %v2001_v45  ;;  %v4680_v33 = vld [vmem:[#allocation38_spill] sm:$0xff]  ;;  %v1998_v3 = vld [vmem:[%s4422_s1 + $0x8] sm:$0xff] }
 0x264   : > { %v1397_v7 = vpop.permute.xlu2 %1396  ;;  %1420 = vrot.lane.b32.xlu0 %v633_v53, %s2514_s20  ;;  %v4674_v53 = vld [vmem:[#allocation27_spill] sm:$0xff]  ;;  %v1805_v38 = vsel %vm1799_vm3, %v1772_v9, %v4675_v27  ;;  %v2439_v28 = vld [vmem:[#allocation2 + $0x48] sm:$0xff] }
 0x265   : > { %v3966_v10 = vsel %vm1898_vm6, %v1873_v2, %v1397_v7  ;;  %v1313_v12 = vpop.permute.xlu1 %1312  ;;  %v1843_v6 = vsel %vm1832_vm4, %v1810_v62, %v4674_v53  ;;  %v1838_v49 = vsel %vm1832_vm4, %v1805_v38, %v4677_v52  ;;  %v4681_v62 = vld [vmem:[#allocation13_spill] sm:$0xff]  ;;  %v657_v9 = vld [vmem:[#allocation2 + $0xb1] sm:$0xff] }
 0x266   : > { %v3969_v19 = vsel %vm1865_vm5, %v1862_v51, %v1313_v12  ;;  %v1387_v22 = vpop.permute.xlu0 %1386  ;;  %v1876_v55 = vsel %vm1865_vm5, %v1843_v6, %v3713_v44  ;;  %v4679_v51 = vld [vmem:[#allocation50_spill] sm:$0xff]  ;;  %v1740_v54 = vsel %vm332_vm0, %v2439_v28, %v4681_v62  ;;  %v4684_v38 = vld [vmem:[#allocation83_spill] sm:$0xff]  ;;  %v4690_v62 = vld [vmem:[#allocation21_spill] sm:$0xff] }
 0x267   : > { %v3973_v20 = vsel %vm1898_vm6, %v3691_v8, %v1387_v22  ;;  %v1767_v8 = vsel %vm1766_vm2, %v1734_v57, %v4670_v24  ;;  %v1871_v12 = vsel %vm1865_vm5, %v1838_v49, %v4679_v51  ;;  %v665_v24 = vld [vmem:[#allocation2 + $0x111] sm:$0xff]  ;;  %v4687_v49 = vld [vmem:[#allocation108_spill] sm:$0xff] }
 0x268   : > { %v1800_v18 = vsel %vm1799_vm3, %v1767_v8, %v4673_v23  ;;  %v1997_v8 = vld [vmem:[%s4422_s1] sm:$0xff]  ;;  %v4683_v6 = vld [vmem:[#allocation58_spill] sm:$0xff] }
 0x269   : > { %v1833_v41 = vsel %vm1832_vm4, %v1800_v18, %v4676_v17  ;;  %v2440_v23 = vld [vmem:[#allocation2 + $0x80] sm:$0xff]  ;;  %v4682_v18 = vld [vmem:[#allocation11_spill] sm:$0xff]  ;;  %v1773_v27 = vsel %vm1766_vm2, %v1740_v54, %v4683_v6  ;;  %v2441_v28 = vld [vmem:[#allocation2 + $0x90] sm:$0xff] }
 0x26a   : > { %1530 = vrot.lane.b32.xlu2 %v656_v15, %s2515_s22  ;;  %v1866_v2 = vsel %vm1865_vm5, %v1833_v41, %v4678_v4  ;;  %v680_v15 = vld [vmem:[#allocation2 + $0x4a] sm:$0xff]  ;;  %v1745_v53 = vsel %vm332_vm0, %v2440_v23, %v4682_v18  ;;  %v4692_v23 = vld [vmem:[#allocation91_spill] sm:$0xff]  ;;  %v4693_v18 = vld [vmem:[#allocation100_spill] sm:$0xff] }
 0x26b   : > { %1514 = vrot.lane.b32.xlu1 %v648_v32, %s2515_s22  ;;  %v2000_v32 = vld [vmem:[%s4422_s1 + $0x18] sm:$0xff]  ;;  %v1778_v17 = vsel %vm1766_vm2, %v1745_v53, %v4684_v38  ;;  %v4685_v41 = vld [vmem:[#allocation97_spill] sm:$0xff]  ;;  %v4694_v6 = vld [vmem:[#allocation26_spill] sm:$0xff] }
 0x26c   : > { %v1403_v1 = vpop.permute.xlu2 %1402  ;;  %1658 = vrot.lane.b32.xlu0 %v688_v60, %s2516_s23  ;;  %2377 = vmatpush.msra.mxu2 %v2000_v32  ;;  %v4691_v54 = vld [vmem:[#allocation69_spill] sm:$0xff] }
 0x26d   : > { %v4009_v7 = vsel %vm1898_vm6, %v1876_v55, %v1403_v1  ;;  %v1383_v37 = vpop.permute.xlu1 %1382  ;;  %2376 = vmatpush.msra.mxu1 %v2000_v32  ;;  %2378 = vmatpush.msra.mxu3 %v2000_v32  ;;  %v1806_v55 = vsel %vm1799_vm3, %v1773_v27, %v4685_v41  ;;  %v4686_v1 = vld [vmem:[#allocation98_spill] sm:$0xff]  ;;  %v4695_v38 = vld [vmem:[#allocation101_spill] sm:$0xff] }
 0x26e   : > { %v4014_v25 = vsel %vm1898_vm6, %v1866_v2, %v1383_v37  ;;  %v1393_v44 = vpop.permute.xlu0 %1392  ;;  %2115 = vmatpush.msra.mxu0 %v2000_v32  ;;  %2380 = vmatpush.msra.mxu2 %v1999_v21  ;;  %v1811_v52 = vsel %vm1799_vm3, %v1778_v17, %v4686_v1  ;;  %v1839_v4 = vsel %vm1832_vm4, %v1806_v55, %v4687_v49  ;;  %v4688_v37 = vld [vmem:[#allocation107_spill] sm:$0xff]  ;;  %v4696_v17 = vld [vmem:[#allocation34_spill] sm:$0xff]  ;;  %v666_v49 = vld [vmem:[#allocation2 + $0x121] sm:$0xff] }
 0x26f   : > { %v4017_v22 = vsel %vm1898_vm6, %v1871_v12, %v1393_v44  ;;  %2379 = vmatpush.msra.mxu1 %v1999_v21  ;;  %2381 = vmatpush.msra.mxu3 %v1999_v21  ;;  %v1844_v51 = vsel %vm1832_vm4, %v1811_v52, %v4688_v37  ;;  %v4689_v12 = vld [vmem:[#allocation39_spill] sm:$0xff]  ;;  %v650_v37 = vld [vmem:[#allocation2 + $0x61] sm:$0xff] }
 0x270   : > { %2116 = vmatpush.msra.mxu0 %v1999_v21  ;;  %2383 = vmatpush.msra.mxu2 %v1998_v3  ;;  %v1872_v44 = vsel %vm1865_vm5, %v1839_v4, %v4689_v12  ;;  %v1877_v45 = vsel %vm1865_vm5, %v1844_v51, %v3768_v11  ;;  %v689_v4 = vld [vmem:[#allocation2 + $0xb2] sm:$0xff]  ;;  %v2442_v12 = vld [vmem:[#allocation2 + $0x60] sm:$0xff] }
 0x271   : > { %2382 = vmatpush.msra.mxu1 %v1998_v3  ;;  %2384 = vmatpush.msra.mxu3 %v1998_v3 }
 0x272   : > { %1642 = vrot.lane.b32.xlu2 %v680_v15, %s2516_s23  ;;  %2386 = vmatpush.msra.mxu2 %v1997_v8 }
 0x273   : > { %1436 = vrot.lane.b32.xlu1 %v641_v59, %s2514_s20  ;;  %2385 = vmatpush.msra.mxu1 %v1997_v8 }
 0x274   : > { %v1409_v31 = vpop.permute.xlu2 %1408  ;;  %1676 = vrot.lane.b32.xlu0 %v697_v63, %s2516_s23  ;;  %2387 = vmatpush.msra.mxu3 %v1997_v8 }
 0x275   : > { %v4030_v57 = vsel %vm1898_vm6, %v3744_v50, %v1409_v31  ;;  %v1389_v47 = vpop.permute.xlu1 %1388  ;;  %v673_v50 = vld [vmem:[#allocation2 + $0x171] sm:$0xff]  ;;  %2117 = vmatpush.msra.mxu0 %v1998_v3 }
 0x276   : > { %v4034_v60 = vsel %vm1898_vm6, %v4680_v33, %v1389_v47  ;;  %v4036_v39 = vpop.permute.xlu0 %1398  ;;  %v649_v31 = vld [vmem:[#allocation2 + $0x51] sm:$0xff] }
 0x277   : > { %2118 = vmatpush.msra.mxu0 %v1997_v8  ;;  %v705_v47 = vld [vmem:[#allocation2 + $0x172] sm:$0xff]  ;;  %v1746_v8 = vsel %vm332_vm0, %v2441_v28, %v4690_v62  ;;  %v4700_v62 = vld [vmem:[#allocation96_spill] sm:$0xff] }
 0x278   : > { %v681_v33 = vld [vmem:[#allocation2 + $0x52] sm:$0xff] }
 0x27a   : > { %1564 = vrot.lane.b32.xlu2 %v673_v50, %s2515_s22 }
 0x27b   : > { %1548 = vrot.lane.b32.xlu1 %v665_v24, %s2515_s22  ;;  %v634_v24 = vld [vmem:[#allocation2 + $0x120] sm:$0xff] }
 0x27c   : > { %v1415_v2 = vpop.permute.xlu2 %1414  ;;  %1532 = vrot.lane.b32.xlu0 %v657_v9, %s2515_s22  ;;  %v1779_v9 = vsel %vm1766_vm2, %v1746_v8, %v4691_v54  ;;  %v698_v54 = vld [vmem:[#allocation2 + $0x122] sm:$0xff] }
 0x27d   : > { %v1395_v15 = vpop.permute.xlu1 %1394  ;;  %v1812_v53 = vsel %vm1799_vm3, %v1779_v9, %v4693_v18 }
 0x27e   : > { %v4071_v59 = vsel %vm1898_vm6, %v1872_v44, %v1395_v15  ;;  %v1405_v63 = vpop.permute.xlu0 %1404  ;;  %v4697_v44 = vld [vmem:[#allocation9_spill] sm:$0xff] }
 0x27f   : > { %v4074_v32 = vsel %vm1898_vm6, %v1877_v45, %v1405_v63  ;;  %v1742_v15 = vsel %vm332_vm0, %v2442_v12, %v4697_v44  ;;  %v1915_v63 = vsel %vm1898_vm6, %v3773_v13, %v1415_v2  ;;  %v643_v2 = vld [vmem:[#allocation2 + $0x188] sm:$0xff] }
 0x282   : > { %1516 = vrot.lane.b32.xlu2 %v649_v31, %s2515_s22  ;;  %v4698_v31 = vld [vmem:[#allocation43_spill] sm:$0xff] }
 0x283   : > { %1692 = vrot.lane.b32.xlu1 %v705_v47, %s2516_s23 }
 0x284   : > { %v1431_v21 = vpop.permute.xlu2 %1430  ;;  %1644 = vrot.lane.b32.xlu0 %v681_v33, %s2516_s23 }
 0x285   : > { %v4079_v3 = vpop.permute.xlu1 %1400 }
 0x286   : > { %v1411_v11 = vpop.permute.xlu0 %1410 }
 0x287   : > { %v4083_v50 = vsel %vm1898_vm6, %v3801_v0, %v1411_v11  ;;  %v1845_v0 = vsel %vm1832_vm4, %v1812_v53, %v4694_v6  ;;  %v4699_v11 = vld [vmem:[#allocation78_spill] sm:$0xff]  ;;  %v4702_v53 = vld [vmem:[#allocation32_spill] sm:$0xff] }
 0x288   : > { %v1878_v41 = vsel %vm1865_vm5, %v1845_v0, %v4696_v17 }
 0x28a   : > { %1438 = vrot.lane.b32.xlu2 %v4692_v23, %s2514_s20  ;;  %v4701_v23 = vld [vmem:[#allocation106_spill] sm:$0xff] }
 0x28b   : > { %1422 = vrot.lane.b32.xlu1 %v634_v24, %s2514_s20  ;;  %v1775_v24 = vsel %vm1766_vm2, %v1742_v15, %v4699_v11  ;;  %v690_v15 = vld [vmem:[#allocation2 + $0xc2] sm:$0xff] }
 0x28c   : > { %v1671_v27 = vpop.permute.xlu2 %1670  ;;  %1566 = vrot.lane.b32.xlu0 %v4695_v38, %s2515_s22  ;;  %v1808_v8 = vsel %vm1799_vm3, %v1775_v24, %v4700_v62  ;;  %v4705_v62 = vld [vmem:[#allocation63_spill] sm:$0xff] }
 0x28d   : > { %v1407_v55 = vpop.permute.xlu1 %1406  ;;  %v1841_v13 = vsel %vm1832_vm4, %v1808_v8, %v4701_v23  ;;  %v4706_v23 = vld [vmem:[#allocation99_spill] sm:$0xff] }
 0x28e   : > { %v4101_v1 = vsel %vm1898_vm6, %v1878_v41, %v1407_v55  ;;  %v1417_v52 = vpop.permute.xlu0 %1416  ;;  %v1874_v18 = vsel %vm1865_vm5, %v1841_v13, %v3739_v30  ;;  %v635_v41 = vld [vmem:[#allocation2 + $0x128] sm:$0xff] }
 0x28f   : > { %v1907_v6 = vsel %vm1898_vm6, %v1874_v18, %v4036_v39  ;;  %v658_v55 = vld [vmem:[#allocation2 + $0xc1] sm:$0xff]  ;;  %v1916_v24 = vsel %vm1898_vm6, %v3832_v5, %v1417_v52 }
 0x290   : > { %v4707_v18 = vld [vmem:[#allocation109_spill] sm:$0xff] }
 0x292   : > { %1550 = vrot.lane.b32.xlu2 %v666_v49, %s2515_s22  ;;  %v667_v49 = vld [vmem:[#allocation2 + $0x129] sm:$0xff] }
 0x293   : > { %1660 = vrot.lane.b32.xlu1 %v689_v4, %s2516_s23  ;;  %v1923_v4 = vsel %vm1898_vm6, %v3796_v40, %v1431_v21  ;;  %v2443_v40 = vld [vmem:[#allocation2 + $0x68] sm:$0xff] }
 0x294   : > { %v1527_v51 = vpop.permute.xlu2 %1526  ;;  %1518 = vrot.lane.b32.xlu0 %v650_v37, %s2515_s22  ;;  %v4704_v21 = vld [vmem:[#allocation17_spill] sm:$0xff] }
 0x295   : > { %v1413_v45 = vpop.permute.xlu1 %1412  ;;  %v1940_v0 = vsel %vm1931_vm9, %v1907_v6, %v1527_v51  ;;  %v1743_v11 = vsel %vm332_vm0, %v2443_v40, %v4704_v21  ;;  %v636_v6 = vld [vmem:[#allocation2 + $0x138] sm:$0xff] }
 0x296   : > { %v4112_v47 = vsel %vm1898_vm6, %v4698_v31, %v1413_v45  ;;  %v1543_v33 = vpop.permute.xlu0 %1542  ;;  %v682_v45 = vld [vmem:[#allocation2 + $0x62] sm:$0xff]  ;;  %v4703_v31 = vld [vmem:[#allocation18_spill] sm:$0xff]  ;;  %v1776_v8 = vsel %vm1766_vm2, %v1743_v11, %v4705_v62  ;;  %v644_v40 = vld [vmem:[#allocation2 + $0x198] sm:$0xff] }
 0x297   : > { %v1948_v28 = vsel %vm1931_vm9, %v1915_v63, %v1543_v33  ;;  %v1809_v13 = vsel %vm1799_vm3, %v1776_v8, %v4706_v23  ;;  %v700_v21 = vld [vmem:[#allocation2 + $0x13a] sm:$0xff] }
 0x298   : > { %v1981_v9 = vsel %vm1964_vm8, %v1948_v28, %v1671_v27  ;;  %v676_v62 = vld [vmem:[#allocation2 + $0x199] sm:$0xff] }
 0x299   : > { %2350 = vmatmul.msk.f32.vlgmr.msra.gmra.mxu2 %vm2002_vm10, %v1981_v9  ;;  %v699_v9 = vld [vmem:[#allocation2 + $0x12a] sm:$0xff]  ;;  %v668_v8 = vld [vmem:[#allocation2 + $0x139] sm:$0xff] }
 0x29a   : > { %1694 = vrot.lane.b32.xlu2 %v4702_v53, %s2516_s23  ;;  %v1842_v53 = vsel %vm1832_vm4, %v1809_v13, %v4707_v18  ;;  %v652_v18 = vld [vmem:[#allocation2 + $0x79] sm:$0xff] }
 0x29b   : > { %1678 = vrot.lane.b32.xlu1 %v698_v54, %s2516_s23 }
 0x29c   : > { %v1655_v27 = vpop.permute.xlu2 %1654  ;;  %1440 = vrot.lane.b32.xlu0 %v643_v2, %s2514_s20 }
 0x29d   : > { %v4132_v38 = vpop.permute.xlu1 %1418  ;;  %v1973_v17 = vsel %vm1964_vm8, %v1940_v0, %v1655_v27  ;;  %v4708_v0 = vld [vmem:[#allocation28_spill] sm:$0xff]  ;;  %v4709_v27 = vld [vmem:[#allocation102_spill] sm:$0xff] }
 0x29e   : > { %2342 = vmatmul.msk.f32.vlgmr.msra.gmra.mxu1 %vm2002_vm10, %v1973_v17  ;;  %v1687_v30 = vpop.permute.xlu0 %1686  ;;  %v1875_v5 = vsel %vm1865_vm5, %v1842_v53, %v4708_v0  ;;  %v708_v53 = vld [vmem:[#allocation2 + $0x19a] sm:$0xff] }
 0x29f   : > { %v1908_v52 = vsel %vm1898_vm6, %v1875_v5, %v4079_v3  ;;  %v659_v3 = vld [vmem:[#allocation2 + $0xc9] sm:$0xff] }
 0x2a2   : > { %1424 = vrot.lane.b32.xlu2 %v635_v41, %s2514_s20 }
 0x2a3   : > { %1534 = vrot.lane.b32.xlu1 %v658_v55, %s2515_s22 }
 0x2a4   : > { %v1673_v39 = vpop.permute.xlu2 %1672  ;;  %1552 = vrot.lane.b32.xlu0 %v667_v49, %s2515_s22 }
 0x2a5   : > { %v1559_v37 = vpop.permute.xlu1 %1558 }
 0x2a6   : > { %v1956_v51 = vsel %vm1931_vm9, %v1923_v4, %v1559_v37  ;;  %v1433_v12 = vpop.permute.xlu0 %1432  ;;  %v651_v37 = vld [vmem:[#allocation2 + $0x69] sm:$0xff] }
 0x2a7   : > { %v1989_v44 = vsel %vm1964_vm8, %v1956_v51, %v1687_v30  ;;  %v691_v51 = vld [vmem:[#allocation2 + $0xca] sm:$0xff] }
 0x2a8   : > { %2358 = vmatmul.msk.f32.vlgmr.msra.gmra.mxu3 %vm2002_vm10, %v1989_v44 }
 0x2aa   : > { %1662 = vrot.lane.b32.xlu2 %v690_v15, %s2516_s23 }
 0x2ab   : > { %1646 = vrot.lane.b32.xlu1 %v682_v45, %s2516_s23 }
 0x2ac   : > { %v1529_v63 = vpop.permute.xlu2 %1528  ;;  %1696 = vrot.lane.b32.xlu0 %v4703_v31, %s2516_s23 }
 0x2ad   : > { %v1511_v33 = vpop.permute.xlu1 %1510  ;;  %v1941_v17 = vsel %vm1931_vm9, %v1908_v52, %v1529_v63 }
 0x2ae   : > { %v1545_v28 = vpop.permute.xlu0 %1544  ;;  %v1932_v41 = vsel %vm1931_vm9, %v4014_v25, %v1511_v33  ;;  %v1924_v25 = vsel %vm1898_vm6, %v3867_v34, %v1433_v12  ;;  %v683_v33 = vld [vmem:[#allocation2 + $0x6a] sm:$0xff]  ;;  %v1917_v34 = vsel %vm1898_vm6, %v3737_v48, %v4132_v38 }
 0x2af   : > { %v1949_v54 = vsel %vm1931_vm9, %v1916_v24, %v1545_v28 }
 0x2b0   : > { %v1982_v2 = vsel %vm1964_vm8, %v1949_v54, %v1673_v39 }
 0x2b1   : > { %2351 = vmatmul.msk.f32.gmra.mxu2 %vm2002_vm10, %v1982_v2 }
 0x2b2   : > { %1680 = vrot.lane.b32.xlu2 %v699_v9, %s2516_s23  ;;  %v660_v9 = vld [vmem:[#allocation2 + $0xd9] sm:$0xff] }
 0x2b3   : > { %1568 = vrot.lane.b32.xlu1 %v4709_v27, %s2515_s22 }
 0x2b4   : > { %v1657_v30 = vpop.permute.xlu2 %1656  ;;  %1426 = vrot.lane.b32.xlu0 %v636_v6, %s2514_s20  ;;  %v684_v6 = vld [vmem:[#allocation2 + $0x7a] sm:$0xff] }
 0x2b5   : > { %v1639_v55 = vpop.permute.xlu1 %1638  ;;  %v1974_v49 = vsel %vm1964_vm8, %v1941_v17, %v1657_v30  ;;  %v645_v30 = vld [vmem:[#allocation2 + $0x1a0] sm:$0xff] }
 0x2b6   : > { %v1965_v39 = vsel %vm1964_vm8, %v1932_v41, %v1639_v55  ;;  %2343 = vmatmul.msk.f32.gmra.mxu1 %vm2002_vm10, %v1974_v49  ;;  %v1689_v4 = vpop.permute.xlu0 %1688  ;;  %v637_v41 = vld [vmem:[#allocation2 + $0x140] sm:$0xff] }
 0x2b7   : > { %2334 = vmatmul.msk.f32.vlgmr.msra.gmra.mxu0 %vm2002_vm10, %v1965_v39  ;;  %v677_v55 = vld [vmem:[#allocation2 + $0x1a1] sm:$0xff] }
 0x2ba   : > { %1536 = vrot.lane.b32.xlu2 %v659_v3, %s2515_s22 }
 0x2bb   : > { %1520 = vrot.lane.b32.xlu1 %v651_v37, %s2515_s22 }
 0x2bc   : > { %v1675_v44 = vpop.permute.xlu2 %1674  ;;  %1664 = vrot.lane.b32.xlu0 %v691_v51, %s2516_s23 }
 0x2bd   : > { %v1561_v15 = vpop.permute.xlu1 %1560 }
 0x2be   : > { %v1957_v45 = vsel %vm1931_vm9, %v1924_v25, %v1561_v15  ;;  %v1435_v63 = vpop.permute.xlu0 %1434  ;;  %v692_v25 = vld [vmem:[#allocation2 + $0xda] sm:$0xff] }
 0x2bf   : > { %v1990_v31 = vsel %vm1964_vm8, %v1957_v45, %v1689_v4  ;;  %v1925_v5 = vsel %vm1898_vm6, %v3936_v56, %v1435_v63  ;;  %v653_v15 = vld [vmem:[#allocation2 + $0x81] sm:$0xff] }
 0x2c0   : > { %2359 = vmatmul.msk.f32.gmra.mxu3 %vm2002_vm10, %v1990_v31  ;;  %v709_v63 = vld [vmem:[#allocation2 + $0x1a2] sm:$0xff] }
 0x2c1   : > { %v701_v31 = vld [vmem:[#allocation2 + $0x142] sm:$0xff] }
 0x2c2   : > { %1648 = vrot.lane.b32.xlu2 %v683_v33, %s2516_s23  ;;  %v693_v33 = vld [vmem:[#allocation2 + $0xe2] sm:$0xff] }
 0x2c3   : > { %1442 = vrot.lane.b32.xlu1 %v644_v40, %s2514_s20 }
 0x2c4   : > { %v1531_v11 = vpop.permute.xlu2 %1530  ;;  %1682 = vrot.lane.b32.xlu0 %v700_v21, %s2516_s23 }
 0x2c5   : > { %v1513_v24 = vpop.permute.xlu1 %1512  ;;  %v1942_v56 = vsel %vm1931_vm9, %v4009_v7, %v1531_v11 }
 0x2c6   : > { %v1547_v12 = vpop.permute.xlu0 %1546  ;;  %v1933_v48 = vsel %vm1931_vm9, %v3899_v61, %v1513_v24 }
 0x2c7   : > { %v1950_v28 = vsel %vm1931_vm9, %v1917_v34, %v1547_v12 }
 0x2c8   : > { %v1983_v54 = vsel %vm1964_vm8, %v1950_v28, %v1675_v44  ;;  %v669_v44 = vld [vmem:[#allocation2 + $0x141] sm:$0xff] }
 0x2c9   : > { %2352 = vmatmul.msk.f32.gmra.mxu2 %vm2002_vm10, %v1983_v54  ;;  %v685_v28 = vld [vmem:[#allocation2 + $0x82] sm:$0xff] }
 0x2ca   : > { %1570 = vrot.lane.b32.xlu2 %v676_v62, %s2515_s22  ;;  %v661_v62 = vld [vmem:[#allocation2 + $0xe1] sm:$0xff] }
 0x2cb   : > { %1554 = vrot.lane.b32.xlu1 %v668_v8, %s2515_s22 }
 0x2cc   : > { %v1643_v23 = vpop.permute.xlu2 %1642  ;;  %1538 = vrot.lane.b32.xlu0 %v660_v9, %s2515_s22 }
 0x2cd   : > { %v1641_v38 = vpop.permute.xlu1 %1640 }
 0x2ce   : > { %v1966_v13 = vsel %vm1964_vm8, %v1933_v48, %v1641_v38  ;;  %v1691_v2 = vpop.permute.xlu0 %1690 }
 0x2cf   : > { %2335 = vmatmul.msk.f32.gmra.mxu0 %vm2002_vm10, %v1966_v13 }
 0x2d2   : > { %1522 = vrot.lane.b32.xlu2 %v652_v18, %s2515_s22 }
 0x2d3   : > { %1698 = vrot.lane.b32.xlu1 %v708_v53, %s2516_s23 }
 0x2d4   : > { %v1565_v0 = vpop.permute.xlu2 %1564  ;;  %1650 = vrot.lane.b32.xlu0 %v684_v6, %s2516_s23 }
 0x2d5   : > { %v1563_v61 = vpop.permute.xlu1 %1562 }
 0x2d6   : > { %v1958_v52 = vsel %vm1931_vm9, %v1925_v5, %v1563_v61  ;;  %v1421_v27 = vpop.permute.xlu0 %1420 }
 0x2d7   : > { %v1991_v17 = vsel %vm1964_vm8, %v1958_v52, %v1691_v2  ;;  %v1918_v21 = vsel %vm1898_vm6, %v3804_v36, %v1421_v27 }
 0x2d8   : > { %2360 = vmatmul.msk.f32.gmra.mxu3 %vm2002_vm10, %v1991_v17 }
 0x2da   : > { %1444 = vrot.lane.b32.xlu2 %v645_v30, %s2514_s20 }
 0x2db   : > { %1428 = vrot.lane.b32.xlu1 %v637_v41, %s2514_s20  ;;  %s2372_s20 = sshll.u32 %s2564_s19, 8 }
 0x2dc   : > { %v1517_v49 = vpop.permute.xlu2 %1516  ;;  %1572 = vrot.lane.b32.xlu0 %v677_v55, %s2515_s22  ;;  %s2260_s27 = scalar_lea.hbm %s4425_s4, %s2372_s20 }
 0x2dd   : > { %v1515_v39 = vpop.permute.xlu1 %1514  ;;  %s2263_s29 = sshll.u32 %s2260_s27, 4  ;;  %s2264_s29 = int_to_ptr.hbm [resolvable:$true] %s2263_s29 }
 0x2de   : > { %v1934_v4 = vsel %vm1931_vm9, %v3973_v20, %v1515_v39  ;;  %v1659_v3 = vpop.permute.xlu0 %1658  ;;  %s2458_s5 = sshra.s32 %s2264_s29, 4  ;;  %s2459_s5 = int_to_ptr.hbm [resolvable:$true] %s2458_s5 }
 0x2df   : > { %v1967_v37 = vsel %vm1964_vm8, %v1934_v4, %v1643_v23  ;;  %v1975_v51 = vsel %vm1964_vm8, %v1942_v56, %v1659_v3  ;;  %v1935_v23 = vsel %vm1931_vm9, %v4034_v60, %v1517_v49  ;;  %s2460_s6 = scalar_lea.hbm %s2459_s5, 256  ;;  %p2465_p0 = scmp.lt.s32.totalorder %s2459_s5, %s4425_s4 }
 0x2e0   : > { %2336 = vmatmul.msk.f32.gmra.mxu0 %vm2002_vm10, %v1967_v37  ;;  %2344 = vmatmul.msk.f32.gmra.mxu1 %vm2002_vm10, %v1975_v51  ;;  %p2461_p11 = scmp.ne.s32.totalorder %s2459_s5, %s2460_s6  ;;  %p2466_p1 = scmp.lt.s32.totalorder %s2464_s8, %s2460_s6 }
 0x2e2   : > { %1556 = vrot.lane.b32.xlu2 %v669_v44, %s2515_s22  ;;  %p2462_p12 = pnand %p2461_p11, %p2581_p5  ;;  %p2467_p2 = por %p2466_p1, %p2465_p0 }
 0x2e3   : > { %1666 = vrot.lane.b32.xlu1 %v692_v25, %s2516_s23 }
 0x2e4   : > { %v1439_v7 = vpop.permute.xlu2 %1438  ;;  %1524 = vrot.lane.b32.xlu0 %v653_v15, %s2515_s22  ;;  %p2463_p13 = pneg %p2462_p12 }
 0x2e5   : > { %v1437_v20 = vpop.permute.xlu1 %1436  ;;  %v1927_v18 = vsel %vm1898_vm6, %v3907_v26, %v1439_v7 }
 0x2e6   : > { %v1677_v45 = vpop.permute.xlu0 %1676  ;;  %v1926_v8 = vsel %vm1898_vm6, %v3827_v14, %v1437_v20  ;;  %p2468_p3 = pnand %p2467_p2, %p2463_p13 }
 0x2e7   : > { %v1959_v36 = vsel %vm1931_vm9, %v1926_v8, %v1565_v0 }
 0x2ea   : > { %1700 = vrot.lane.b32.xlu2 %v709_v63, %s2516_s23 }
 0x2eb   : > { %1684 = vrot.lane.b32.xlu1 %v701_v31, %s2516_s23 }
 0x2ec   : > { %v1551_v40 = vpop.permute.xlu2 %1550  ;;  %1668 = vrot.lane.b32.xlu0 %v693_v33, %s2516_s23 }
 0x2ed   : > { %v1549_v11 = vpop.permute.xlu1 %1548 }
 0x2ee   : > { %v1951_v24 = vsel %vm1931_vm9, %v1918_v21, %v1549_v11  ;;  %v1533_v34 = vpop.permute.xlu0 %1532 }
 0x2ef   : > { %v1984_v12 = vsel %vm1964_vm8, %v1951_v24, %v1677_v45  ;;  %v1943_v5 = vsel %vm1931_vm9, %v4074_v32, %v1533_v34 }
 0x2f0   : > { %2353 = vmatmul.msk.f32.gmra.mxu2 %vm2002_vm10, %v1984_v12 }
 0x2f2   : > { %1652 = vrot.lane.b32.xlu2 %v685_v28, %s2516_s23 }
 0x2f3   : > { %1540 = vrot.lane.b32.xlu1 %v661_v62, %s2515_s22 }
 0x2f4   : > { %v1695_v54 = vpop.permute.xlu2 %1694 }
 0x2f5   : > { %v1693_v9 = vpop.permute.xlu1 %1692 }
 0x2f6   : > { %v1992_v48 = vsel %vm1964_vm8, %v1959_v36, %v1693_v9  ;;  %v1645_v38 = vpop.permute.xlu0 %1644 }
 0x2f7   : > { %2361 = vmatmul.msk.f32.gmra.mxu3 %vm2002_vm10, %v1992_v48  ;;  %v1968_v13 = vsel %vm1964_vm8, %v1935_v23, %v1645_v38 }
 0x2f8   : > { %2337 = vmatmul.msk.f32.gmra.mxu0 %vm2002_vm10, %v1968_v13 }
 0x2fc   : > { %v1425_v14 = vpop.permute.xlu2 %1424 }
 0x2fd   : > { %v1423_v2 = vpop.permute.xlu1 %1422  ;;  %v1920_v56 = vsel %vm1898_vm6, %v3766_v42, %v1425_v14 }
 0x2fe   : > { %v1567_v53 = vpop.permute.xlu0 %1566  ;;  %v1919_v26 = vsel %vm1898_vm6, %v3863_v16, %v1423_v2 }
 0x2ff   : > { %v1960_v6 = vsel %vm1931_vm9, %v1927_v18, %v1567_v53  ;;  %v1952_v41 = vsel %vm1931_vm9, %v1919_v26, %v1551_v40 }
 0x300   : > { %v1993_v60 = vsel %vm1964_vm8, %v1960_v6, %v1695_v54 }
 0x301   : > { %2362 = vmatmul.msk.f32.gmra.mxu3 %vm2002_vm10, %v1993_v60 }
 0x304   : > { %v1663_v0 = vpop.permute.xlu2 %1662 }
 0x305   : > { %v1661_v61 = vpop.permute.xlu1 %1660 }
 0x306   : > { %v1976_v52 = vsel %vm1964_vm8, %v1943_v5, %v1661_v61  ;;  %v1519_v27 = vpop.permute.xlu0 %1518 }
 0x307   : > { %2345 = vmatmul.msk.f32.gmra.mxu1 %vm2002_vm10, %v1976_v52  ;;  %v1936_v25 = vsel %vm1931_vm9, %v3933_v29, %v1519_v27 }
 0x30c   : > { %v1681_v17 = vpop.permute.xlu2 %1680 }
 0x30d   : > { %v1679_v30 = vpop.permute.xlu1 %1678 }
 0x30e   : > { %v1985_v55 = vsel %vm1964_vm8, %v1952_v41, %v1679_v30  ;;  %v1441_v49 = vpop.permute.xlu0 %1440 }
 0x30f   : > { %2354 = vmatmul.msk.f32.gmra.mxu2 %vm2002_vm10, %v1985_v55  ;;  %v1928_v45 = vsel %vm1898_vm6, %v3969_v19, %v1441_v49 }
 0x314   : > { %v1537_v32 = vpop.permute.xlu2 %1536 }
 0x315   : > { %v1535_v39 = vpop.permute.xlu1 %1534  ;;  %v1945_v24 = vsel %vm1931_vm9, %v4030_v57, %v1537_v32 }
 0x316   : > { %v1944_v4 = vsel %vm1931_vm9, %v4101_v1, %v1535_v39  ;;  %v1553_v3 = vpop.permute.xlu0 %1552 }
 0x317   : > { %v1977_v16 = vsel %vm1964_vm8, %v1944_v4, %v1663_v0  ;;  %v1953_v37 = vsel %vm1931_vm9, %v1920_v56, %v1553_v3 }
 0x318   : > { %2346 = vmatmul.msk.f32.gmra.mxu1 %vm2002_vm10, %v1977_v16  ;;  %v1986_v51 = vsel %vm1964_vm8, %v1953_v37, %v1681_v17 }
 0x319   : > { %2355 = vmatmul.msk.f32.gmra.mxu2 %vm2002_vm10, %v1986_v51 }
 0x31b   : > { %v2144_v44 = vpop.f32.mrf.mxu1 }
 0x31c   : > { %2224 = vst.msk [vmem:[%s4267_s14 + $0x40] sm:$0xff] %vm1964_vm8, %v2144_v44  ;;  %v1649_v42 = vpop.permute.xlu2 %1648  ;;  %v2168_v1 = vpop.f32.mrf.mxu2 }
 0x31d   : > { %v1647_v15 = vpop.permute.xlu1 %1646  ;;  %2232 = vst.msk [vmem:[%s4267_s14 + $0x80] sm:$0xff] %vm1964_vm8, %v2168_v1 }
 0x31e   : > { %v1969_v7 = vsel %vm1964_vm8, %v1936_v25, %v1647_v15  ;;  %v1697_v20 = vpop.permute.xlu0 %1696 }
 0x31f   : > { %2338 = vmatmul.msk.f32.gmra.mxu0 %vm2002_vm10, %v1969_v7 }
 0x324   : > { %v1571_v63 = vpop.permute.xlu2 %1570 }
 0x325   : > { %v1569_v31 = vpop.permute.xlu1 %1568 }
 0x326   : > { %v1961_v33 = vsel %vm1931_vm9, %v1928_v45, %v1569_v31  ;;  %v1427_v40 = vpop.permute.xlu0 %1426 }
 0x327   : > { %v1994_v21 = vsel %vm1964_vm8, %v1961_v33, %v1697_v20  ;;  %v1921_v23 = vsel %vm1898_vm6, %v3835_v58, %v1427_v40 }
 0x328   : > { %2363 = vmatmul.msk.f32.gmra.mxu3 %vm2002_vm10, %v1994_v21 }
 0x32b   : > { %v2192_v29 = vpop.f32.mrf.mxu3 }
 0x32c   : > { %2240 = vst.msk [vmem:[%s4267_s14 + $0xc0] sm:$0xff] %vm1964_vm8, %v2192_v29  ;;  %v1523_v12 = vpop.permute.xlu2 %1522 }
 0x32d   : > { %v1521_v11 = vpop.permute.xlu1 %1520  ;;  %v1938_v60 = vsel %vm1931_vm9, %v4071_v59, %v1523_v12 }
 0x32e   : > { %v1937_v19 = vsel %vm1931_vm9, %v4017_v22, %v1521_v11  ;;  %v1665_v34 = vpop.permute.xlu0 %1664 }
 0x32f   : > { %v1970_v28 = vsel %vm1964_vm8, %v1937_v19, %v1649_v42  ;;  %v1978_v62 = vsel %vm1964_vm8, %v1945_v24, %v1665_v34 }
 0x330   : > { %2339 = vmatmul.msk.f32.gmra.mxu0 %vm2002_vm10, %v1970_v28  ;;  %2347 = vmatmul.msk.f32.gmra.mxu1 %vm2002_vm10, %v1978_v62 }
 0x333   : > { %v2147_v8 = vpop.f32.mrf.mxu1 }
 0x334   : > { %v2120_v54 = vpop.f32.mrf.mxu0  ;;  %2225 = vst.msk [vmem:[%s4267_s14 + $0x48] sm:$0xff] %vm1964_vm8, %v2147_v8  ;;  %v2171_v9 = vpop.f32.mrf.mxu2 }
 0x335   : > { %2216 = vst.msk [vmem:[%s4267_s14] sm:$0xff] %vm1964_vm8, %v2120_v54  ;;  %v1443_v57 = vpop.permute.xlu1 %1442  ;;  %v1445_v36 = vpop.permute.xlu2 %1444 }
 0x336   : > { %2233 = vst.msk [vmem:[%s4267_s14 + $0x88] sm:$0xff] %vm1964_vm8, %v2171_v9  ;;  %v1683_v22 = vpop.permute.xlu0 %1682  ;;  %v1929_v18 = vsel %vm1898_vm6, %v3860_v46, %v1443_v57  ;;  %v1930_v17 = vsel %vm1898_vm6, %v3940_v43, %v1445_v36 }
 0x337   : > { %v1962_v58 = vsel %vm1931_vm9, %v1929_v18, %v1571_v63 }
 0x33d   : > { %v1555_v48 = vpop.permute.xlu1 %1554  ;;  %v1557_v2 = vpop.permute.xlu2 %1556 }
 0x33e   : > { %v1954_v38 = vsel %vm1931_vm9, %v1921_v23, %v1555_v48  ;;  %v1539_v13 = vpop.permute.xlu0 %1538 }
 0x33f   : > { %v1987_v14 = vsel %vm1964_vm8, %v1954_v38, %v1683_v22  ;;  %v1946_v55 = vsel %vm1931_vm9, %v4083_v50, %v1539_v13 }
 0x340   : > { %2356 = vmatmul.msk.f32.gmra.mxu2 %vm2002_vm10, %v1987_v14 }
 0x343   : > { %v2195_v53 = vpop.f32.mrf.mxu3 }
 0x344   : > { %2241 = vst.msk [vmem:[%s4267_s14 + $0xc8] sm:$0xff] %vm1964_vm8, %v2195_v53 }
 0x345   : > { %v1699_v6 = vpop.permute.xlu1 %1698  ;;  %v1701_v46 = vpop.permute.xlu2 %1700 }
 0x346   : > { %v1995_v0 = vsel %vm1964_vm8, %v1962_v58, %v1699_v6  ;;  %v1651_v5 = vpop.permute.xlu0 %1650 }
 0x347   : > { %2364 = vmatmul.msk.f32.gmra.mxu3 %vm2002_vm10, %v1995_v0  ;;  %v1971_v61 = vsel %vm1964_vm8, %v1938_v60, %v1651_v5 }
 0x348   : > { %2340 = vmatmul.msk.f32.gmra.mxu0 %vm2002_vm10, %v1971_v61 }
 0x34c   : > { %v2123_v52 = vpop.f32.mrf.mxu0  ;;  %v2174_v27 = vpop.f32.mrf.mxu2 }
 0x34d   : > { %2217 = vst.msk [vmem:[%s4267_s14 + $0x8] sm:$0xff] %vm1964_vm8, %v2123_v52  ;;  %v1429_v26 = vpop.permute.xlu1 %1428  ;;  %v1653_v32 = vpop.permute.xlu2 %1652 }
 0x34e   : > { %2234 = vst.msk [vmem:[%s4267_s14 + $0x90] sm:$0xff] %vm1964_vm8, %v2174_v27  ;;  %v1573_v59 = vpop.permute.xlu0 %1572  ;;  %v1922_v3 = vsel %vm1898_vm6, %v3904_v35, %v1429_v26 }
 0x34f   : > { %v1963_v30 = vsel %vm1931_vm9, %v1930_v17, %v1573_v59  ;;  %v1955_v51 = vsel %vm1931_vm9, %v1922_v3, %v1557_v2 }
 0x350   : > { %v1996_v41 = vsel %vm1964_vm8, %v1963_v30, %v1701_v46 }
 0x351   : > { %2365 = vmatmul.msk.f32.gmra.mxu3 %vm2002_vm10, %v1996_v41 }
 0x355   : > { %v1667_v49 = vpop.permute.xlu1 %1666 }
 0x356   : > { %v1979_v39 = vsel %vm1964_vm8, %v1946_v55, %v1667_v49  ;;  %v1525_v43 = vpop.permute.xlu0 %1524 }
 0x357   : > { %2348 = vmatmul.msk.f32.gmra.mxu1 %vm2002_vm10, %v1979_v39  ;;  %v1939_v56 = vsel %vm1931_vm9, %v3966_v10, %v1525_v43 }
 0x358   : > { %v1972_v4 = vsel %vm1964_vm8, %v1939_v56, %v1653_v32 }
 0x359   : > { %2341 = vmatmul.msk.f32.gmra.mxu0 %vm2002_vm10, %v1972_v4 }
 0x35b   : > { %v2198_v16 = vpop.f32.mrf.mxu3 }
 0x35c   : > { %2242 = vst.msk [vmem:[%s4267_s14 + $0xd0] sm:$0xff] %vm1964_vm8, %v2198_v16 }
 0x35d   : > { %v1685_v50 = vpop.permute.xlu1 %1684  ;;  %v2126_v37 = vpop.f32.mrf.mxu0 }
 0x35e   : > { %2218 = vst.msk [vmem:[%s4267_s14 + $0x10] sm:$0xff] %vm1964_vm8, %v2126_v37  ;;  %v1988_v10 = vsel %vm1964_vm8, %v1955_v51, %v1685_v50  ;;  %v2150_v44 = vpop.f32.mrf.mxu1  ;;  %v1669_v35 = vpop.permute.xlu0 %1668 }
 0x35f   : > { %2357 = vmatmul.msk.f32.gmra.mxu2 %vm2002_vm10, %v1988_v10  ;;  %2226 = vst.msk [vmem:[%s4267_s14 + $0x50] sm:$0xff] %vm1964_vm8, %v2150_v44 }
 0x365   : > { %v1541_v42 = vpop.permute.xlu1 %1540 }
 0x366   : > { %v1947_v1 = vsel %vm1931_vm9, %v4112_v47, %v1541_v42 }
 0x367   : > { %v1980_v25 = vsel %vm1964_vm8, %v1947_v1, %v1669_v35 }
 0x368   : > { %2349 = vmatmul.msk.f32.gmra.mxu1 %vm2002_vm10, %v1980_v25 }
 0x373   : > { %v2177_v15 = vpop.f32.mrf.mxu2 }
 0x374   : > { %2235 = vst.msk [vmem:[%s4267_s14 + $0x98] sm:$0xff] %vm1964_vm8, %v2177_v15 }
 0x375   : > { %v2129_v7 = vpop.f32.mrf.mxu0 }
 0x376   : > { %2219 = vst.msk [vmem:[%s4267_s14 + $0x18] sm:$0xff] %vm1964_vm8, %v2129_v7 }
 0x37a   : > { %v2201_v20 = vpop.f32.mrf.mxu3 }
 0x37b   : > { %2243 = vst.msk [vmem:[%s4267_s14 + $0xd8] sm:$0xff] %vm1964_vm8, %v2201_v20 }
 0x384   : > { %v2153_v45 = vpop.f32.mrf.mxu1  ;;  %v2204_v47 = vpop.f32.mrf.mxu3 }
 0x385   : > { %2227 = vst.msk [vmem:[%s4267_s14 + $0x58] sm:$0xff] %vm1964_vm8, %v2153_v45 }
 0x386   : > { %2244 = vst.msk [vmem:[%s4267_s14 + $0xe0] sm:$0xff] %vm1964_vm8, %v2204_v47 }
 0x392   : > { %v2180_v63 = vpop.f32.mrf.mxu2 }
 0x393   : > { %2236 = vst.msk [vmem:[%s4267_s14 + $0xa0] sm:$0xff] %vm1964_vm8, %v2180_v63 }
 0x395   : > { %v2156_v31 = vpop.f32.mrf.mxu1 }
 0x396   : > { %2228 = vst.msk [vmem:[%s4267_s14 + $0x60] sm:$0xff] %vm1964_vm8, %v2156_v31 }
 0x39c   : > { %v2132_v33 = vpop.f32.mrf.mxu0  ;;  %v2183_v40 = vpop.f32.mrf.mxu2 }
 0x39d   : > { %2220 = vst.msk [vmem:[%s4267_s14 + $0x20] sm:$0xff] %vm1964_vm8, %v2132_v33 }
 0x39e   : > { %2237 = vst.msk [vmem:[%s4267_s14 + $0xa8] sm:$0xff] %vm1964_vm8, %v2183_v40 }
 0x3ab   : > { %v2207_v21 = vpop.f32.mrf.mxu3 }
 0x3ac   : > { %2245 = vst.msk [vmem:[%s4267_s14 + $0xe8] sm:$0xff] %vm1964_vm8, %v2207_v21 }
 0x3ad   : > { %v2135_v29 = vpop.f32.mrf.mxu0  ;;  %v2159_v11 = vpop.f32.mrf.mxu1 }
 0x3ae   : > { %2221 = vst.msk [vmem:[%s4267_s14 + $0x28] sm:$0xff] %vm1964_vm8, %v2135_v29 }
 0x3af   : > { %2229 = vst.msk [vmem:[%s4267_s14 + $0x68] sm:$0xff] %vm1964_vm8, %v2159_v11 }
 0x3c3   : > { %v2186_v24 = vpop.f32.mrf.mxu2 }
 0x3c4   : > { %2238 = vst.msk [vmem:[%s4267_s14 + $0xb0] sm:$0xff] %vm1964_vm8, %v2186_v24 }
 0x3c5   : > { %v2138_v19 = vpop.f32.mrf.mxu0 }
 0x3c6   : > { %2222 = vst.msk [vmem:[%s4267_s14 + $0x30] sm:$0xff] %vm1964_vm8, %v2138_v19 }
 0x3ca   : > { %v2210_v34 = vpop.f32.mrf.mxu3 }
 0x3cb   : > { %2246 = vst.msk [vmem:[%s4267_s14 + $0xf0] sm:$0xff] %vm1964_vm8, %v2210_v34 }
 0x3d4   : > { %v2162_v12 = vpop.f32.mrf.mxu1  ;;  %v2213_v28 = vpop.f32.mrf.mxu3 }
 0x3d5   : > { %2230 = vst.msk [vmem:[%s4267_s14 + $0x70] sm:$0xff] %vm1964_vm8, %v2162_v12 }
 0x3d6   : > { %2247 = vst.msk [vmem:[%s4267_s14 + $0xf8] sm:$0xff] %vm1964_vm8, %v2213_v28  ;;  %v2141_v62 = vpop.f32.mrf.mxu0 }
 0x3d7   : > { %2223 = vst.msk [vmem:[%s4267_s14 + $0x38] sm:$0xff] %vm1964_vm8, %v2141_v62 }
 0x3e2   : > { %v2189_v8 = vpop.f32.mrf.mxu2 }
 0x3e3   : > { %2239 = vst.msk [vmem:[%s4267_s14 + $0xb8] sm:$0xff] %vm1964_vm8, %v2189_v8 }
 0x3e5   : > { %v2165_v54 = vpop.f32.mrf.mxu1 }
 0x3e6   : > { %2231 = vst.msk [vmem:[%s4267_s14 + $0x78] sm:$0xff] %vm1964_vm8, %v2165_v54 }
 0x3e7   : > { %2471 = shalt.err (!%p2468_p3)
}
 0x3e8   : > { %s2517_s12 = smov 128  }
 0x3e9   : > { %2388 = dma.vmem_to_hbm [thread:$0]  (%p2581_p5), %s2262_s28, 4096, %s2264_s29, %s2249_s30, %s2517_s12, %s2517_s12, %s2510_s11  }
 0x3ea PF: > { %p2394_p4 = scmp.ge.s32.totalorder %s2506_s18, 2  ;;  %s2278_s13 = sand.u32 1, %s2494_s15  }
 0x3eb   : > { %s2279_s14 = scalar_lea.sflag [#allocation4], %s2278_s13 }
 0x3ec   : > { %p2391_p7 = pnand %p2394_p4, %p2585_p6 }
 0x3ee   : > { %p2392_p8 = pneg %p2391_p7 }
 0x3f0   : > { %2489 = dma.done.wait (%p2392_p8), %s2279_s14, 4096  }
 0x3f1   : > { %2491 = vsyncadd (%p2392_p8), %s2279_s14, 4294963200  ;;  %p14_p9 = scmp.ge.s32.totalorder %s2568_s21, 4   ;;  %s4710_s15 = smov %s2498_s16 }
 0x3f2   : > { %s4711_s16 = smov %s2502_s17  ;;  %s4712_s17 = smov %s2579_s24 }
 0x3f3   : > { %s4713_s18 = smov %s2568_s21  ;;  %16 = sbr.rel (!%p14_p9) target bundleno = 3 (0x3), region = 73 }
 0x3f8   :  { %2285 = vsyncpa [#allocation4], 1 }
 0x3f9   :  { %2287 = vsyncpa [#allocation4 + $0x1], 1 }

</bundles_post_ra>
